<compile_context>
chip_gen: v7x
topology: tpu7x:2x2x1
jax: 0.10.0
libtpu: 0.0.40
codegen_flags: <defaults>
</compile_context>

<pallas_src>
import math
import functools

import jax
import jax.numpy as jnp
from jax import lax
from jax.experimental import pallas as pl
from jax.experimental.pallas import tpu as pltpu


def _attention_kernel(x_ref, wq_ref, wk_ref, wv_ref, bq_ref, bk_ref, bv_ref,
                      wo_ref, bo_ref, o_ref, k_scr, v_scr, *,
                      n_head, q_tile, k_tile, compute_dtype, exact_softmax):
    H = 8                                    # hardcoded head count (reference)
    cd = compute_dtype
    T, C = x_ref.shape                       # x block: (T, C), full sequence
    hd = C // H                              # == C // n_head (wrapper asserts)
    scale = 1.0 / math.sqrt(C // n_head)
    qi = pl.program_id(1)
    n_kv = T // k_tile                       # static number of key tiles

    # ---- K/V projection + head-major relayout: once per batch row, cached in
    #      VMEM scratch and reused by every query tile of this row.
    @pl.when(qi == 0)
    def _():
        xf = x_ref[...].astype(cd)                                   # (T, C)
        k = jnp.dot(xf, wk_ref[...], preferred_element_type=jnp.float32) + bk_ref[...]
        v = jnp.dot(xf, wv_ref[...], preferred_element_type=jnp.float32) + bv_ref[...]
        k_scr[...] = k.reshape(T, H, hd).transpose(1, 0, 2).astype(k_scr.dtype)
        v_scr[...] = v.reshape(T, H, hd).transpose(1, 0, 2).astype(v_scr.dtype)

    # ---- Q projection for this query tile only (scale folded into q).
    q_off = pl.multiple_of(qi * q_tile, q_tile)
    xq = x_ref[pl.ds(q_off, q_tile), :].astype(cd)                   # (q_tile, C)
    q = jnp.dot(xq, wq_ref[...], preferred_element_type=jnp.float32) + bq_ref[...]
    q = q * scale
    qh = q.reshape(q_tile, H, hd).transpose(1, 0, 2).astype(cd)      # (H, q_tile, hd)

    neg = jnp.float32(-1e30)                 # finite fill: no inf-inf NaN hazard

    # ---- Online-softmax (flash) loop over key tiles.
    def kv_step(kt, carry):
        m_prev, l_prev, acc_prev = carry
        k_off = kt * k_tile
        if not isinstance(kt, int):
            k_off = pl.multiple_of(k_off, k_tile)
        kh = k_scr[:, pl.ds(k_off, k_tile), :]                       # (H, k_tile, hd)
        vh = v_scr[:, pl.ds(k_off, k_tile), :]
        s = jnp.einsum('htd,hsd->hts', qh, kh,
                       preferred_element_type=jnp.float32)           # (H, q_tile, k_tile)
        row = lax.broadcasted_iota(jnp.int32, (q_tile, k_tile), 0) + q_off
        col = lax.broadcasted_iota(jnp.int32, (q_tile, k_tile), 1) + k_off
        s = jnp.where((col <= row)[None, :, :], s, neg)
        m_cur = jnp.max(s, axis=-1, keepdims=True)
        m_new = jnp.maximum(m_prev, m_cur)
        alpha = jnp.exp(m_prev - m_new)
        p = jnp.exp(s - m_new)
        l_new = alpha * l_prev + jnp.sum(p, axis=-1, keepdims=True)
        pv = jnp.einsum('hts,hsd->htd', p.astype(cd), vh,
                        preferred_element_type=jnp.float32)          # (H, q_tile, hd)
        acc_new = alpha * acc_prev + pv
        return m_new, l_new, acc_new

    m0 = jnp.full((H, q_tile, 1), neg, jnp.float32)
    l0 = jnp.zeros((H, q_tile, 1), jnp.float32)
    acc0 = jnp.zeros((H, q_tile, hd), jnp.float32)

    if n_kv == 1:
        # Single key tile: fully static path, no loop.
        m, l, acc = kv_step(0, (m0, l0, acc0))
    else:
        # Causal skip: only key tiles whose first key is <= last query row.
        kv_hi = (q_off + q_tile + k_tile - 1) // k_tile
        m, l, acc = lax.fori_loop(0, kv_hi, kv_step, (m0, l0, acc0))

    # attn_dropout: identity in eval mode.
    inv_l = (1.0 / l) if exact_softmax else pl.reciprocal(l, approx=True)
    y = (acc * inv_l).transpose(1, 0, 2).reshape(q_tile, C)          # (q_tile, C) f32

    # ---- Output projection (weight pre-transposed & pre-cast in the wrapper).
    out = jnp.dot(y.astype(cd), wo_ref[...], preferred_element_type=jnp.float32) + bo_ref[...]
    # resid_dropout: identity in eval mode.
    o_ref[...] = out.astype(o_ref.dtype)


def _pad(n, m):
    return ((n + m - 1) // m) * m


def _estimate_vmem_bytes(T, C, q_tile, k_tile, H, hd, cd_bytes):
    """Rough VMEM footprint estimate (lane/sublane padding included)."""
    f32 = 4
    C_p = _pad(C, 128)
    hd_p = _pad(hd, 128)
    weights = 4 * C * C_p * cd_bytes                         # single-buffered
    biases = 4 * 8 * C_p * f32
    x_blk = 2 * _pad(T, 8) * C_p * f32                       # double-buffered
    o_blk = 2 * _pad(q_tile, 8) * C_p * f32
    kv_scr = 2 * H * _pad(T, 8) * hd_p * cd_bytes
    transient = (3 * _pad(T, 8) * C_p                        # K/V/Q projections
                 + 3 * H * _pad(q_tile, 8) * _pad(k_tile, 128)   # s, p, mask
                 + 4 * H * _pad(q_tile, 8) * hd_p) * f32         # qh, acc, pv, y
    return weights + biases + x_blk + o_blk + kv_scr + transient


def _invariant_spec(shape, single_buffer):
    """BlockSpec for a grid-invariant operand; single-buffered when supported."""
    index_map = lambda b, qi: (0,) * len(shape)
    if single_buffer:
        try:
            return pl.BlockSpec(shape, index_map, pipeline_mode=pl.Buffered(1))
        except (TypeError, AttributeError):
            pass
    return pl.BlockSpec(shape, index_map)


def causal_self_attention(x, w_attn, b_attn, w_proj, b_proj, *, n_head,
                          q_tile=None, k_tile=None,
                          compute_dtype=jnp.float32,
                          exact_softmax=False,
                          single_buffer_invariants=True,
                          vmem_limit_bytes=None):
    """x: (B, T, C) float32.  Returns (B, T, C) float32."""
    B, T, C = x.shape
    H = 8
    # The reference hardcodes 8 heads in the reshape while using C // n_head as
    # head dim: only shape-consistent when 8 * (C // n_head) == C.
    assert H * (C // n_head) == C, (
        "reference forward is only shape-consistent when 8 * (C // n_head) == C")
    hd = C // H

    # Tile defaults: 128 matches the MXU on v5e and leaves headroom on v7x's
    # 64 MiB VMEM; on v6e, q_tile/k_tile=256 can be passed to fill its 256x256
    # MXU when T allows.
    if q_tile is None:
        q_tile = 128 if (T % 128 == 0) else T
    if k_tile is None:
        k_tile = 128 if (T % 128 == 0) else T
    assert T % q_tile == 0, "T must be divisible by q_tile"
    assert T % k_tile == 0, "T must be divisible by k_tile"
    n_q = T // q_tile

    cd = jnp.dtype(compute_dtype)

    # One-time weight prep (outside the kernel): transpose to matmul-ready
    # (in, out) layout, split the fused QKV weight/bias per tensor, and
    # pre-cast weights to the MXU compute dtype (halves DMA/VMEM for bf16).
    w_attn_t = jnp.transpose(w_attn).astype(cd)          # (C, 3C)
    wq_t = w_attn_t[:, 0 * C:1 * C]
    wk_t = w_attn_t[:, 1 * C:2 * C]
    wv_t = w_attn_t[:, 2 * C:3 * C]
    bq = b_attn[0 * C:1 * C].reshape(1, C)
    bk = b_attn[1 * C:2 * C].reshape(1, C)
    bv = b_attn[2 * C:3 * C].reshape(1, C)
    w_proj_t = jnp.transpose(w_proj).astype(cd)          # (C, C)
    bo = b_proj.reshape(1, C)

    if vmem_limit_bytes is None:
        est = _estimate_vmem_bytes(T, C, q_tile, k_tile, H, hd, cd.itemsize)
        vmem_limit_bytes = min(56 << 20, max(32 << 20, 2 * est + (8 << 20)))

    kernel = functools.partial(_attention_kernel, n_head=n_head,
                               q_tile=q_tile, k_tile=k_tile,
                               compute_dtype=cd, exact_softmax=exact_softmax)

    wspec = _invariant_spec((C, C), single_buffer_invariants)
    bspec = _invariant_spec((1, C), single_buffer_invariants)
    x_spec = pl.BlockSpec((None, T, C), lambda b, qi: (b, 0, 0))        # full seq per row
    out_spec = pl.BlockSpec((None, q_tile, C), lambda b, qi: (b, qi, 0))

    return pl.pallas_call(
        kernel,
        out_shape=jax.ShapeDtypeStruct((B, T, C), x.dtype),
        grid_spec=pltpu.PrefetchScalarGridSpec(
            num_scalar_prefetch=0,
            grid=(B, n_q),
            in_specs=[
                x_spec,                       # x (queries sliced from this block too)
                wspec, wspec, wspec,          # wq_t, wk_t, wv_t
                bspec, bspec, bspec,          # bq, bk, bv
                wspec,                        # w_proj_t
                bspec,                        # b_proj
            ],
            out_specs=out_spec,
            scratch_shapes=[
                pltpu.VMEM((H, T, hd), cd),   # K cache, head-major, per batch row
                pltpu.VMEM((H, T, hd), cd),   # V cache, head-major, per batch row
            ],
        ),
        compiler_params=pltpu.CompilerParams(
            # qi carries the K/V scratch dependency -> must be "arbitrary".
            dimension_semantics=("parallel", "arbitrary"),
            vmem_limit_bytes=int(vmem_limit_bytes),
        ),
    )(x, wq_t, wk_t, wv_t, bq, bk, bv, w_proj_t, bo)


def _reference(x, w_attn, b_attn, w_proj, b_proj, *, n_head):
    """Pure-JAX reference mirroring the PyTorch forward (eval mode)."""
    B, T, C = x.shape
    head_dim = C // n_head
    qkv = x @ w_attn.T + b_attn
    q, k, v = jnp.split(qkv, 3, axis=-1)
    q = q.reshape(B, T, 8, head_dim).transpose(0, 2, 1, 3)
    k = k.reshape(B, T, 8, head_dim).transpose(0, 2, 1, 3)
    v = v.reshape(B, T, 8, head_dim).transpose(0, 2, 1, 3)
    att = (q @ jnp.swapaxes(k, -2, -1)) * (1.0 / math.sqrt(head_dim))
    mask = jnp.tril(jnp.ones((T, T), dtype=bool))[None, None]
    att = jnp.where(mask, att, -jnp.inf)
    att = jax.nn.softmax(att, axis=-1)
    y = att @ v
    y = y.transpose(0, 2, 1, 3).reshape(B, T, C)
    return y @ w_proj.T + b_proj


if __name__ == "__main__":
    def run_case(B, T, C, heads, **kw):
        key = jax.random.PRNGKey(0)
        kx, kw1, kb1, kw2, kb2 = jax.random.split(key, 5)
        x = jax.random.normal(kx, (B, T, C), dtype=jnp.float32)
        bound = 1.0 / math.sqrt(C)    # nn.Linear-style uniform init
        w_attn = jax.random.uniform(kw1, (3 * C, C), jnp.float32, -bound, bound)
        b_attn = jax.random.uniform(kb1, (3 * C,), jnp.float32, -bound, bound)
        w_proj = jax.random.uniform(kw2, (C, C), jnp.float32, -bound, bound)
        b_proj = jax.random.uniform(kb2, (C,), jnp.float32, -bound, bound)
        ref = _reference(x, w_attn, b_attn, w_proj, b_proj, n_head=heads)
        out = causal_self_attention(x, w_attn, b_attn, w_proj, b_proj,
                                    n_head=heads, **kw)
        out = jax.block_until_ready(out)
        return out, ref

    # 1) Module-scale config (dim=32, seq_len=8, heads=8): f32 MXU path,
    #    approximate (EUP) softmax reciprocal.
    out, ref = run_case(2, 8, 32, 8)
    assert out.shape == (2, 8, 32)
    assert jnp.allclose(out, ref, atol=5e-3, rtol=5e-3), "f32 kernel mismatch"

    # 2) Same config with bf16 MXU operands (f32 accumulation / softmax).
    out, ref = run_case(2, 8, 32, 8, compute_dtype=jnp.bfloat16)
    assert jnp.allclose(out, ref, atol=5e-2, rtol=5e-2), "bf16 kernel mismatch"

    # 3) Multi-tile config (T=256, C=64): exercises the per-row cached K/V,
    #    the causal key-tile skip, and the online-softmax loop; exact softmax
    #    normalization for strict parity.
    out, ref = run_case(1, 256, 64, 8, exact_softmax=True)
    assert jnp.allclose(out, ref, atol=2e-3, rtol=2e-3), "flash-loop kernel mismatch"

    print("KERNEL_OK")
</pallas_src>

<mosaic_0001>
module attributes {stable_mosaic.version = 11 : i64} {
  func.func @_attention_kernel(%arg0: i32, %arg1: i32, %arg2: memref<1x8x32xf32, #tpu.memory_space<vmem>>, %arg3: memref<32x32xf32, #tpu.memory_space<vmem>>, %arg4: memref<32x32xf32, #tpu.memory_space<vmem>>, %arg5: memref<32x32xf32, #tpu.memory_space<vmem>>, %arg6: memref<1x32xf32, #tpu.memory_space<vmem>>, %arg7: memref<1x32xf32, #tpu.memory_space<vmem>>, %arg8: memref<1x32xf32, #tpu.memory_space<vmem>>, %arg9: memref<32x32xf32, #tpu.memory_space<vmem>>, %arg10: memref<1x32xf32, #tpu.memory_space<vmem>>, %arg11: memref<1x8x32xf32, #tpu.memory_space<vmem>>, %arg12: memref<8x8x4xf32, #tpu.memory_space<vmem>>, %arg13: memref<8x8x4xf32, #tpu.memory_space<vmem>>) attributes {dimension_semantics = [#tpu.dimension_semantics<parallel>, #tpu.dimension_semantics<arbitrary>], iteration_bounds = array<i64: 2, 1>, scalar_prefetch = 0 : i64, scratch_operands = 2 : i64, tpu.core_type = #tpu.core_type<tc>, window_params = [{transform_indices = @transform_0, window_bounds = array<i64: 1, 8, 32>}, {pipeline_mode = #tpu.pipeline_mode<synchronous>, transform_indices = @transform_1, window_bounds = array<i64: 32, 32>}, {pipeline_mode = #tpu.pipeline_mode<synchronous>, transform_indices = @transform_2, window_bounds = array<i64: 32, 32>}, {pipeline_mode = #tpu.pipeline_mode<synchronous>, transform_indices = @transform_3, window_bounds = array<i64: 32, 32>}, {pipeline_mode = #tpu.pipeline_mode<synchronous>, transform_indices = @transform_4, window_bounds = array<i64: 1, 32>}, {pipeline_mode = #tpu.pipeline_mode<synchronous>, transform_indices = @transform_5, window_bounds = array<i64: 1, 32>}, {pipeline_mode = #tpu.pipeline_mode<synchronous>, transform_indices = @transform_6, window_bounds = array<i64: 1, 32>}, {pipeline_mode = #tpu.pipeline_mode<synchronous>, transform_indices = @transform_7, window_bounds = array<i64: 32, 32>}, {pipeline_mode = #tpu.pipeline_mode<synchronous>, transform_indices = @transform_8, window_bounds = array<i64: 1, 32>}, {transform_indices = @transform_9, window_bounds = array<i64: 1, 8, 32>}]} {
    %c0_i32 = arith.constant 0 : i32
    %0 = arith.cmpi eq, %arg1, %c0_i32 : i32
    %1 = arith.extui %0 : i1 to i32
    %c0_i32_0 = arith.constant 0 : i32
    %2 = arith.cmpi ne, %1, %c0_i32_0 : i32
    scf.if %2 {
      %c0_30 = arith.constant 0 : index
      %c0_31 = arith.constant 0 : index
      %c0_32 = arith.constant 0 : index
      %64 = vector.load %arg2[%c0_30, %c0_31, %c0_32] : memref<1x8x32xf32, #tpu.memory_space<vmem>>, vector<1x8x32xf32>
      %65 = vector.shape_cast %64 : vector<1x8x32xf32> to vector<8x32xf32>
      %c0_33 = arith.constant 0 : index
      %c0_34 = arith.constant 0 : index
      %66 = vector.load %arg4[%c0_33, %c0_34] : memref<32x32xf32, #tpu.memory_space<vmem>>, vector<32x32xf32>
      %cst_35 = arith.constant dense<0.000000e+00> : vector<8x32xf32>
      %67 = tpu.matmul %65, %66, %cst_35 {dimension_numbers = #tpu.dot_dimension_numbers<[1], [0], [0], [1], [0, 0, 1, 1], [], []>} : vector<8x32xf32>, vector<32x32xf32>, vector<8x32xf32> -> vector<8x32xf32>
      %c0_36 = arith.constant 0 : index
      %c0_37 = arith.constant 0 : index
      %68 = vector.load %arg7[%c0_36, %c0_37] : memref<1x32xf32, #tpu.memory_space<vmem>>, vector<1x32xf32>
      %69 = vector.broadcast %68 : vector<1x32xf32> to vector<8x32xf32>
      %70 = arith.addf %67, %69 : vector<8x32xf32>
      %c0_38 = arith.constant 0 : index
      %c0_39 = arith.constant 0 : index
      %71 = vector.load %arg5[%c0_38, %c0_39] : memref<32x32xf32, #tpu.memory_space<vmem>>, vector<32x32xf32>
      %cst_40 = arith.constant dense<0.000000e+00> : vector<8x32xf32>
      %72 = tpu.matmul %65, %71, %cst_40 {dimension_numbers = #tpu.dot_dimension_numbers<[1], [0], [0], [1], [0, 0, 1, 1], [], []>} : vector<8x32xf32>, vector<32x32xf32>, vector<8x32xf32> -> vector<8x32xf32>
      %c0_41 = arith.constant 0 : index
      %c0_42 = arith.constant 0 : index
      %73 = vector.load %arg8[%c0_41, %c0_42] : memref<1x32xf32, #tpu.memory_space<vmem>>, vector<1x32xf32>
      %74 = vector.broadcast %73 : vector<1x32xf32> to vector<8x32xf32>
      %75 = arith.addf %72, %74 : vector<8x32xf32>
      %76 = vector.shape_cast %70 : vector<8x32xf32> to vector<8x8x4xf32>
      %77 = tpu.transpose %76, [1, 0, 2] : vector<8x8x4xf32> -> vector<8x8x4xf32>
      %c0_43 = arith.constant 0 : index
      %c0_44 = arith.constant 0 : index
      %c0_45 = arith.constant 0 : index
      %78 = vector.load %arg12[%c0_43, %c0_44, %c0_45] : memref<8x8x4xf32, #tpu.memory_space<vmem>>, vector<8x8x4xf32>
      tpu.vector_store %arg12[%c0_43, %c0_44, %c0_45], %77 {strides = array<i32>} : memref<8x8x4xf32, #tpu.memory_space<vmem>>, vector<8x8x4xf32>,
      %79 = vector.shape_cast %75 : vector<8x32xf32> to vector<8x8x4xf32>
      %80 = tpu.transpose %79, [1, 0, 2] : vector<8x8x4xf32> -> vector<8x8x4xf32>
      %c0_46 = arith.constant 0 : index
      %c0_47 = arith.constant 0 : index
      %c0_48 = arith.constant 0 : index
      %81 = vector.load %arg13[%c0_46, %c0_47, %c0_48] : memref<8x8x4xf32, #tpu.memory_space<vmem>>, vector<8x8x4xf32>
      tpu.vector_store %arg13[%c0_46, %c0_47, %c0_48], %80 {strides = array<i32>} : memref<8x8x4xf32, #tpu.memory_space<vmem>>, vector<8x8x4xf32>,
    } else {
    }
    %c8_i32 = arith.constant 8 : i32
    %3 = arith.muli %arg1, %c8_i32 : i32
    %4 = tpu.assume_multiple %3, 8 : i32
    %c0 = arith.constant 0 : index
    %5 = arith.index_cast %4 : i32 to index
    %c0_1 = arith.constant 0 : index
    %6 = vector.load %arg2[%c0, %5, %c0_1] : memref<1x8x32xf32, #tpu.memory_space<vmem>>, vector<1x8x32xf32>
    %7 = vector.shape_cast %6 : vector<1x8x32xf32> to vector<8x32xf32>
    %c0_2 = arith.constant 0 : index
    %c0_3 = arith.constant 0 : index
    %8 = vector.load %arg3[%c0_2, %c0_3] : memref<32x32xf32, #tpu.memory_space<vmem>>, vector<32x32xf32>
    %cst = arith.constant dense<0.000000e+00> : vector<8x32xf32>
    %9 = tpu.matmul %7, %8, %cst {dimension_numbers = #tpu.dot_dimension_numbers<[1], [0], [0], [1], [0, 0, 1, 1], [], []>} : vector<8x32xf32>, vector<32x32xf32>, vector<8x32xf32> -> vector<8x32xf32>
    %c0_4 = arith.constant 0 : index
    %c0_5 = arith.constant 0 : index
    %10 = vector.load %arg6[%c0_4, %c0_5] : memref<1x32xf32, #tpu.memory_space<vmem>>, vector<1x32xf32>
    %11 = vector.broadcast %10 : vector<1x32xf32> to vector<8x32xf32>
    %12 = arith.addf %9, %11 : vector<8x32xf32>
    %cst_6 = arith.constant 5.000000e-01 : f32
    %13 = vector.broadcast %cst_6 : f32 to vector<8x32xf32>
    %14 = arith.mulf %12, %13 : vector<8x32xf32>
    %15 = vector.shape_cast %14 : vector<8x32xf32> to vector<8x8x4xf32>
    %16 = tpu.transpose %15, [1, 0, 2] : vector<8x8x4xf32> -> vector<8x8x4xf32>
    %cst_7 = arith.constant -1.000000e+30 : f32
    %17 = vector.broadcast %cst_7 : f32 to vector<8x8x1xf32>
    %cst_8 = arith.constant 0.000000e+00 : f32
    %18 = vector.broadcast %cst_8 : f32 to vector<8x8x1xf32>
    %cst_9 = arith.constant 0.000000e+00 : f32
    %19 = vector.broadcast %cst_9 : f32 to vector<8x8x4xf32>
    %c0_10 = arith.constant 0 : index
    %c0_11 = arith.constant 0 : index
    %c0_12 = arith.constant 0 : index
    %20 = vector.load %arg12[%c0_10, %c0_11, %c0_12] : memref<8x8x4xf32, #tpu.memory_space<vmem>>, vector<8x8x4xf32>
    %c0_13 = arith.constant 0 : index
    %c0_14 = arith.constant 0 : index
    %c0_15 = arith.constant 0 : index
    %21 = vector.load %arg13[%c0_13, %c0_14, %c0_15] : memref<8x8x4xf32, #tpu.memory_space<vmem>>, vector<8x8x4xf32>
    "tpu.trace_start"() <{level = 10 : i32, message = "htd,hsd->hts"}> : () -> ()
    %cst_16 = arith.constant dense<0.000000e+00> : vector<8x8x8xf32>
    %22 = tpu.matmul %16, %20, %cst_16 {dimension_numbers = #tpu.dot_dimension_numbers<[2], [2], [1], [1], [0, 0, 0, 1, 1, 1], [0], [0]>} : vector<8x8x4xf32>, vector<8x8x4xf32>, vector<8x8x8xf32> -> vector<8x8x8xf32>
    "tpu.trace_stop"() : () -> ()
    %23 = tpu.iota {dimensions = array<i32: 0>} : vector<8x8xi32>
    %24 = vector.broadcast %4 : i32 to vector<8x8xi32>
    %25 = arith.addi %23, %24 : vector<8x8xi32>
    %26 = tpu.iota {dimensions = array<i32: 1>} : vector<8x8xi32>
    %c0_i32_17 = arith.constant 0 : i32
    %27 = vector.broadcast %c0_i32_17 : i32 to vector<8x8xi32>
    %28 = arith.addi %26, %27 : vector<8x8xi32>
    %29 = arith.cmpi sle, %28, %25 : vector<8x8xi32>
    %30 = vector.shape_cast %29 : vector<8x8xi1> to vector<1x8x8xi1>
    %cst_18 = arith.constant -1.000000e+30 : f32
    %31 = vector.shape_cast %30 : vector<1x8x8xi1> to vector<1x8x8xi1>
    %32 = vector.broadcast %31 : vector<1x8x8xi1> to vector<8x8x8xi1>
    %33 = vector.broadcast %cst_18 : f32 to vector<8x8x8xf32>
    %34 = arith.select %32, %22, %33 : vector<8x8x8xi1>, vector<8x8x8xf32>
    %cst_19 = arith.constant dense<0xFF800000> : vector<8x8xf32>
    %35 = vector.multi_reduction <maximumf>, %34, %cst_19 [2] : vector<8x8x8xf32> to vector<8x8xf32>
    %36 = vector.shape_cast %35 : vector<8x8xf32> to vector<8x8x1xf32>
    %37 = arith.maximumf %17, %36 : vector<8x8x1xf32>
    %38 = arith.subf %17, %37 : vector<8x8x1xf32>
    %39 = math.exp %38 : vector<8x8x1xf32>
    %40 = vector.broadcast %37 : vector<8x8x1xf32> to vector<8x8x8xf32>
    %41 = arith.subf %34, %40 : vector<8x8x8xf32>
    %42 = math.exp %41 : vector<8x8x8xf32>
    %43 = arith.mulf %39, %18 : vector<8x8x1xf32>
    %cst_20 = arith.constant dense<0.000000e+00> : vector<8x8xf32>
    %44 = vector.multi_reduction <add>, %42, %cst_20 [2] : vector<8x8x8xf32> to vector<8x8xf32>
    %45 = vector.shape_cast %44 : vector<8x8xf32> to vector<8x8x1xf32>
    %46 = arith.addf %43, %45 : vector<8x8x1xf32>
    "tpu.trace_start"() <{level = 10 : i32, message = "hts,hsd->htd"}> : () -> ()
    %cst_21 = arith.constant dense<0.000000e+00> : vector<8x8x4xf32>
    %47 = tpu.matmul %42, %21, %cst_21 {dimension_numbers = #tpu.dot_dimension_numbers<[2], [1], [1], [2], [0, 0, 0, 1, 1, 2], [0], [0]>} : vector<8x8x8xf32>, vector<8x8x4xf32>, vector<8x8x4xf32> -> vector<8x8x4xf32>
    "tpu.trace_stop"() : () -> ()
    %48 = vector.broadcast %39 : vector<8x8x1xf32> to vector<8x8x4xf32>
    %49 = arith.mulf %48, %19 : vector<8x8x4xf32>
    %50 = arith.addf %49, %47 : vector<8x8x4xf32>
    %51 = tpu.reciprocal %46 {approx = true} : vector<8x8x1xf32> -> vector<8x8x1xf32>
    %52 = vector.broadcast %51 : vector<8x8x1xf32> to vector<8x8x4xf32>
    %53 = arith.mulf %50, %52 : vector<8x8x4xf32>
    %54 = tpu.transpose %53, [1, 0, 2] : vector<8x8x4xf32> -> vector<8x8x4xf32>
    %55 = vector.shape_cast %54 : vector<8x8x4xf32> to vector<8x32xf32>
    %c0_22 = arith.constant 0 : index
    %c0_23 = arith.constant 0 : index
    %56 = vector.load %arg9[%c0_22, %c0_23] : memref<32x32xf32, #tpu.memory_space<vmem>>, vector<32x32xf32>
    %cst_24 = arith.constant dense<0.000000e+00> : vector<8x32xf32>
    %57 = tpu.matmul %55, %56, %cst_24 {dimension_numbers = #tpu.dot_dimension_numbers<[1], [0], [0], [1], [0, 0, 1, 1], [], []>} : vector<8x32xf32>, vector<32x32xf32>, vector<8x32xf32> -> vector<8x32xf32>
    %c0_25 = arith.constant 0 : index
    %c0_26 = arith.constant 0 : index
    %58 = vector.load %arg10[%c0_25, %c0_26] : memref<1x32xf32, #tpu.memory_space<vmem>>, vector<1x32xf32>
    %59 = vector.broadcast %58 : vector<1x32xf32> to vector<8x32xf32>
    %60 = arith.addf %57, %59 : vector<8x32xf32>
    %c0_27 = arith.constant 0 : index
    %c0_28 = arith.constant 0 : index
    %c0_29 = arith.constant 0 : index
    %61 = vector.load %arg11[%c0_27, %c0_28, %c0_29] : memref<1x8x32xf32, #tpu.memory_space<vmem>>, vector<1x8x32xf32>
    %62 = vector.shape_cast %61 : vector<1x8x32xf32> to vector<8x32xf32>
    %63 = vector.shape_cast %60 : vector<8x32xf32> to vector<1x8x32xf32>
    tpu.vector_store %arg11[%c0_27, %c0_28, %c0_29], %63 {strides = array<i32>} : memref<1x8x32xf32, #tpu.memory_space<vmem>>, vector<1x8x32xf32>,
    return
  }
  func.func @transform_0(%arg0: i32, %arg1: i32) -> (i32, i32, i32) {
    %c0_i32 = arith.constant 0 : i32
    %c0_i32_0 = arith.constant 0 : i32
    %c0_i32_1 = arith.constant 0 : i32
    return %arg0, %c0_i32, %c0_i32_0 : i32, i32, i32
  }
  func.func @transform_1(%arg0: i32, %arg1: i32) -> (i32, i32) {
    %c0_i32 = arith.constant 0 : i32
    %c0_i32_0 = arith.constant 0 : i32
    %c0_i32_1 = arith.constant 0 : i32
    return %c0_i32, %c0_i32_0 : i32, i32
  }
  func.func @transform_2(%arg0: i32, %arg1: i32) -> (i32, i32) {
    %c0_i32 = arith.constant 0 : i32
    %c0_i32_0 = arith.constant 0 : i32
    %c0_i32_1 = arith.constant 0 : i32
    return %c0_i32, %c0_i32_0 : i32, i32
  }
  func.func @transform_3(%arg0: i32, %arg1: i32) -> (i32, i32) {
    %c0_i32 = arith.constant 0 : i32
    %c0_i32_0 = arith.constant 0 : i32
    %c0_i32_1 = arith.constant 0 : i32
    return %c0_i32, %c0_i32_0 : i32, i32
  }
  func.func @transform_4(%arg0: i32, %arg1: i32) -> (i32, i32) {
    %c0_i32 = arith.constant 0 : i32
    %c0_i32_0 = arith.constant 0 : i32
    %c0_i32_1 = arith.constant 0 : i32
    return %c0_i32, %c0_i32_0 : i32, i32
  }
  func.func @transform_5(%arg0: i32, %arg1: i32) -> (i32, i32) {
    %c0_i32 = arith.constant 0 : i32
    %c0_i32_0 = arith.constant 0 : i32
    %c0_i32_1 = arith.constant 0 : i32
    return %c0_i32, %c0_i32_0 : i32, i32
  }
  func.func @transform_6(%arg0: i32, %arg1: i32) -> (i32, i32) {
    %c0_i32 = arith.constant 0 : i32
    %c0_i32_0 = arith.constant 0 : i32
    %c0_i32_1 = arith.constant 0 : i32
    return %c0_i32, %c0_i32_0 : i32, i32
  }
  func.func @transform_7(%arg0: i32, %arg1: i32) -> (i32, i32) {
    %c0_i32 = arith.constant 0 : i32
    %c0_i32_0 = arith.constant 0 : i32
    %c0_i32_1 = arith.constant 0 : i32
    return %c0_i32, %c0_i32_0 : i32, i32
  }
  func.func @transform_8(%arg0: i32, %arg1: i32) -> (i32, i32) {
    %c0_i32 = arith.constant 0 : i32
    %c0_i32_0 = arith.constant 0 : i32
    %c0_i32_1 = arith.constant 0 : i32
    return %c0_i32, %c0_i32_0 : i32, i32
  }
  func.func @transform_9(%arg0: i32, %arg1: i32) -> (i32, i32, i32) {
    %c0_i32 = arith.constant 0 : i32
    %c0_i32_0 = arith.constant 0 : i32
    return %arg0, %arg1, %c0_i32 : i32, i32, i32
  }
}

</mosaic_0001>

<bundles_post_ra>
// kernel: tpu_custom_call.1
= control target key start
LH: loop header
LB: loop body
LE: loop exit
PB: predicated region body
PF: predicated region fallthrough
CT: control target
= control target key end

     0   :  { %s4983_s0 = inlined_call_operand.hbm [shape: f32[2,8,32], index: 0, kind: input, shape index: {}]   ;;  %s4984_s1 = inlined_call_operand.hbm [shape: f32[32,32], index: 1, kind: input, shape index: {}]   ;;  %s4985_s2 = inlined_call_operand.hbm [shape: f32[32,32], index: 2, kind: input, shape index: {}]   ;;  %s4986_s3 = inlined_call_operand.hbm [shape: f32[32,32], index: 3, kind: input, shape index: {}]   ;;  %s4987_s4 = inlined_call_operand.vmem [shape: f32[1,32], index: 4, kind: input, shape index: {}]   ;;  %s4988_s5 = inlined_call_operand.vmem [shape: f32[1,32], index: 5, kind: input, shape index: {}]   ;;  %s4989_s6 = inlined_call_operand.vmem [shape: f32[1,32], index: 6, kind: input, shape index: {}]   ;;  %s4990_s7 = inlined_call_operand.hbm [shape: f32[32,32], index: 7, kind: input, shape index: {}]   ;;  %s4991_s8 = inlined_call_operand.vmem [shape: f32[1,32], index: 8, kind: input, shape index: {}]   ;;  %s4992_s9 = inlined_call_operand.hbm [shape: f32[2,8,32], index: 9, kind: output, shape index: {}]  }
   0x1   :  { %4999 = sst [smem:[#allocation19_spill]] %s4984_s1 }
   0x2   :  { %5000 = sst [smem:[#allocation20_spill]] %s4991_s8 }
   0x3   :  { %5001 = sst [smem:[#allocation21_spill]] %s4992_s9 }
   0x4   :  { %14 = vsyncpa [#allocation5], 0 }
   0x5   :  { %16 = vsyncpa [#allocation5 + $0x1], 0 }
   0x6   :  { %17 = vsyncpa [#allocation8], 0 }
   0x7   :  { %18 = vsyncpa [#allocation11], 0 }
   0x8   :  { %19 = vsyncpa [#allocation6], 0 }
   0x9   :  { %21 = vsyncpa [#allocation6 + $0x1], 0  ;;  %s4249_s30 = smov 0   ;;  %s4251_s10 = smov 0  }
   0xa   :  { %s4253_s11 = smov 0   ;;  %s4255_s12 = smov 0  }
   0xb   :  { %s4257_s13 = smov 0   ;;  %s4259_s14 = smov 0  }
   0xc LB: > { %5002 = sst [smem:[#allocation18_spill]] %s4162_s12  ;;  %s4993_s15 = sadd.s32 4294967295, %s4170_s14   ;;  %s4170_s14 = sphi %s4259_s14, %s27_s14   ;;  %s4166_s13 = sphi %s4257_s13, %s5029_s13   ;;  %s4162_s12 = sphi %s4255_s12, %s5028_s12   ;;  %s4158_s11 = sphi %s4253_s11, %s5027_s11   ;;  %s4154_s10 = sphi %s4251_s10, %s5026_s10   ;;  %s4150_s30 = sphi %s4249_s30, %s5025_s30  }
   0xd   : > { %p3483_p0 = scmp.ge.s32.totalorder %s4170_s14, 1  ;;  %p4283_p1 = scmp.eq.s32.totalorder %s4993_s15, 0 }
   0xe   : > { %p266_p2 = scmp.lt.s32.totalorder %s4170_s14, 3  ;;  %s4172_s18 = smov [#allocation7]  }
   0xf   : > { %s5003_s16 = scalar_select %p4283_p1, 1, 0 }
  0x10   : > { %p4288_p3 = pnand %p3483_p0, %p266_p2  ;;  %s278_s19 = sshll.u32 %s4172_s18, 4  ;;  %s4292_s19 = int_to_ptr.vmem [resolvable:$true] %s278_s19 }
  0x11   : > { %s4173_s21 = smov [#allocation10]   ;;  %s4174_s23 = smov [#allocation9]  }
  0x12   : > { %s5004_s17 = scalar_select %p4288_p3, 1, 0 }
  0x13   : > { %p3786_p4 = pneg %p4288_p3  ;;  %s304_s22 = sshll.u32 %s4173_s21, 4  ;;  %s4303_s22 = int_to_ptr.vmem [resolvable:$true] %s304_s22 }
  0x14   : > { %s4305_s24 = sshll.u32 %s4174_s23, 4  ;;  %s5006_s1 = sld [smem:[#allocation19_spill]]  ;;  %s292_s24 = int_to_ptr.vmem [resolvable:$true] %s4305_s24 }
  0x15   : > { %p4299_p6 = pnand %p3786_p4, %p4283_p1 }
  0x17   : > { %p4315_p8 = pneg %p4299_p6 }
  0x1a   : > { %s3938_s27 = scalar_lea.hbm %s5006_s1, 512 }
  0x1b   : > { %p3939_p7 = scmp.ne.s32.totalorder %s5006_s1, %s3938_s27  ;;  %p3945_p11 = scmp.lt.u32.totalorder %s3938_s27, %s5006_s1 }
  0x1d   : > { %p3941_p9 = pnand %p4315_p8, %p3939_p7 }
  0x1f   : > { %p3942_p10 = pneg %p3941_p9 }
  0x21   : > { %p3947_p12 = pnand %p3945_p11, %p3942_p10 }
  0x23   : > { %3950 = shalt.err (!%p3947_p12)
}
  0x24   : > { %s3951_s25 = scalar_lea.vmem %s4292_s19, 512  ;;  %p3959_p4 = scmp.lt.s32.totalorder %s4292_s19, %s4292_s19 }
  0x25   : > { %p3952_p13 = scmp.ne.s32.totalorder %s4292_s19, %s3951_s25  ;;  %p3960_p5 = scmp.lt.s32.totalorder %s3951_s25, %s3951_s25 }
  0x27   : > { %p3954_p0 = pnand %p3952_p13, %p4315_p8  ;;  %p3961_p7 = por %p3960_p5, %p3959_p4 }
  0x29   : > { %p3955_p2 = pneg %p3954_p0 }
  0x2b   : > { %p3962_p9 = pnand %p3961_p7, %p3955_p2 }
  0x2d   : > { %3965 = shalt.err (!%p3962_p9)
}
  0x2e   : > { %s4175_s26 = smov 128   ;;  %s4176_s27 = smov 8  }
  0x2f   : > { %3789 = dma.hbm_to_vmem [thread:$0]  (!%p4299_p6), %s5006_s1, 512, %s4292_s19, [#allocation8], %s4175_s26, %s4175_s26, %s4176_s27  }
  0x30   : > { %s3966_s25 = scalar_lea.hbm %s4986_s3, 512 }
  0x31   : > { %p3967_p5 = scmp.ne.s32.totalorder %s4986_s3, %s3966_s25  ;;  %p3973_p12 = scmp.lt.u32.totalorder %s3966_s25, %s4986_s3 }
  0x33   : > { %p3969_p10 = pnand %p3967_p5, %p4315_p8 }
  0x35   : > { %p3970_p11 = pneg %p3969_p10 }
  0x37   : > { %p3975_p13 = pnand %p3973_p12, %p3970_p11 }
  0x39   : > { %3978 = shalt.err (!%p3975_p13)
}
  0x3a   : > { %s3979_s19 = scalar_lea.vmem %s4303_s22, 512  ;;  %p3987_p7 = scmp.lt.s32.totalorder %s4303_s22, %s4303_s22 }
  0x3b   : > { %p3980_p0 = scmp.ne.s32.totalorder %s4303_s22, %s3979_s19  ;;  %p3988_p9 = scmp.lt.s32.totalorder %s3979_s19, %s3979_s19 }
  0x3d   : > { %p3982_p2 = pnand %p3980_p0, %p4315_p8  ;;  %p3989_p5 = por %p3988_p9, %p3987_p7 }
  0x3f   : > { %p3983_p4 = pneg %p3982_p2 }
  0x41   : > { %p3990_p10 = pnand %p3989_p5, %p3983_p4 }
  0x43   : > { %3993 = shalt.err (!%p3990_p10)
}
  0x44   : > { %3795 = dma.hbm_to_vmem [thread:$0]  (!%p4299_p6), %s4986_s3, 512, %s4303_s22, [#allocation11], %s4175_s26, %s4175_s26, %s4176_s27  }
  0x45   : > { %s3994_s28 = scalar_lea.hbm %s4985_s2, 512 }
  0x46   : > { %p3995_p11 = scmp.ne.s32.totalorder %s4985_s2, %s3994_s28  ;;  %p4001_p0 = scmp.lt.u32.totalorder %s3994_s28, %s4985_s2 }
  0x48   : > { %p3997_p12 = pnand %p3995_p11, %p4315_p8 }
  0x4a   : > { %p3998_p13 = pneg %p3997_p12 }
  0x4c   : > { %p4003_p2 = pnand %p4001_p0, %p3998_p13 }
  0x4e   : > { %4006 = shalt.err (!%p4003_p2)
}
  0x4f   : > { %s4007_s19 = scalar_lea.vmem %s292_s24, 512  ;;  %p4015_p5 = scmp.lt.s32.totalorder %s292_s24, %s292_s24 }
  0x50   : > { %p4008_p4 = scmp.ne.s32.totalorder %s292_s24, %s4007_s19  ;;  %p4016_p10 = scmp.lt.s32.totalorder %s4007_s19, %s4007_s19 }
  0x52   : > { %p4010_p7 = pnand %p4008_p4, %p4315_p8  ;;  %p4017_p3 = por %p4016_p10, %p4015_p5 }
  0x54   : > { %p4011_p9 = pneg %p4010_p7 }
  0x56   : > { %p4018_p1 = pnand %p4017_p3, %p4011_p9 }
  0x58   : > { %4021 = shalt.err (!%p4018_p1)
}
  0x59   : > { %3792 = dma.hbm_to_vmem [thread:$0]  (!%p4299_p6), %s4985_s2, 512, %s292_s24, [#allocation8], %s4175_s26, %s4175_s26, %s4176_s27  }
  0x5a   : > { %s4177_s9 = smov [#allocation12]   ;;  %s4022_s29 = scalar_lea.hbm %s4990_s7, 512 }
  0x5b   : > { %s326_s12 = sshll.u32 %s4177_s9, 4  ;;  %p4023_p1 = scmp.ne.s32.totalorder %s4990_s7, %s4022_s29  ;;  %s327_s12 = int_to_ptr.vmem [resolvable:$true] %s326_s12 }
  0x5c   : > { %p4029_p12 = scmp.lt.u32.totalorder %s4022_s29, %s4990_s7 }
  0x5d   : > { %p4025_p3 = pnand %p4023_p1, %p4315_p8 }
  0x5f   : > { %p4026_p11 = pneg %p4025_p3 }
  0x61   : > { %p4031_p13 = pnand %p4029_p12, %p4026_p11 }
  0x63   : > { %4034 = shalt.err (!%p4031_p13)
}
  0x64   : > { %s4035_s24 = scalar_lea.vmem %s327_s12, 512  ;;  %p4043_p7 = scmp.lt.s32.totalorder %s327_s12, %s327_s12 }
  0x65   : > { %p4036_p0 = scmp.ne.s32.totalorder %s327_s12, %s4035_s24  ;;  %p4044_p9 = scmp.lt.s32.totalorder %s4035_s24, %s4035_s24 }
  0x67   : > { %p4038_p2 = pnand %p4036_p0, %p4315_p8  ;;  %p4045_p5 = por %p4044_p9, %p4043_p7 }
  0x69   : > { %p4039_p4 = pneg %p4038_p2 }
  0x6b   : > { %p4046_p10 = pnand %p4045_p5, %p4039_p4 }
  0x6d   : > { %4049 = shalt.err (!%p4046_p10)
}
  0x6e   : > { %3798 = dma.hbm_to_vmem [thread:$0]  (!%p4299_p6), %s4990_s7, 512, %s327_s12, [#allocation11], %s4175_s26, %s4175_s26, %s4176_s27  }
  0x6f   : > { %s3482_s20 = sadd.s32 4294967294, %s4170_s14   ;;  %s39_s18 = sadd.s32 1, %s4166_s13 }
  0x70   : > { %p41_p8 = scmp.ge.s32.totalorder %s39_s18, 2  ;;  %s46_s9 = sadd.s32 1, %s4158_s11 }
  0x71   : > { %p53_p1 = scmp.ne.s32.totalorder %s4158_s11, %s4154_s10  ;;  %p54_p3 = scmp.eq.s32.totalorder %s4170_s14, 0 }
  0x72   : > { %s5031_s18 = smov (%p41_p8, %s39_s18), 0  ;;  %p59_p12 = scmp.ne.s32.totalorder %s4154_s10, %s4150_s30 }
  0x73   : > { %p4416_p11 = por %p54_p3, %p53_p1  ;;  %s43_s26 = ssub.s32 %s4166_s13, %s5031_s18 }
  0x74   : > { %s5009_s27 = sadd.s32 4294967295, %s4170_s14   ;;  %p44_p13 = scmp.eq.s32.totalorder %s43_s26, 0 }
  0x75   : > { %p253_p6 = scmp.eq.s32.totalorder %s5009_s27, 1  ;;  %p5010_p0 = scmp.ne.s32.totalorder %s5003_s16, 0 }
  0x76   : > { %p259_p7 = scmp.eq.s32.totalorder %s3482_s20, 1  ;;  %p3811_p5 = scmp.lt.s32.totalorder %s4170_s14, 2 }
  0x77   : > { %p4428_p2 = por %p5010_p0, %p59_p12  ;;  %p4432_p4 = por %p253_p6, %p53_p1 }
  0x78   : > { %s4437_s29 = scalar_select %p44_p13, %s4158_s11, %s46_s9  }
  0x79   : > { %s5012_s28 = scalar_select %p4432_p4, 1, 0 }
  0x7a   : > { %p4439_p9 = por %p259_p7, %p59_p12  ;;  %s343_s23 = sand.u32 1, %s4158_s11  }
  0x7b   : > { %s3490_s25 = sshll.u32 %s4166_s13, 7  ;;  %s3489_s19 = sshll.u32 %s343_s23, 3 }
  0x7c   : > { %s5013_s21 = scalar_select %p4439_p9, 1, 0 }
  0x7d   : > { %s4449_s8 = scalar_lea.hbm %s4983_s0, %s3490_s25  ;;  %s347_s20 = scalar_lea.vmem [#allocation4], %s3489_s19 }
  0x7e   : > { %s354_s9 = sshll.u32 %s347_s20, 4  ;;  %p4453_p10 = pnand %p3811_p5, %p4416_p11  ;;  %s4457_s9 = int_to_ptr.vmem [resolvable:$true] %s354_s9 }
  0x7f   : > { %s344_s27 = scalar_lea.sflag [#allocation5], %s343_s23  ;;  %s4050_s1 = scalar_lea.hbm %s4449_s8, 128 }
  0x80   : > { %p4051_p8 = scmp.ne.s32.totalorder %s4449_s8, %s4050_s1  ;;  %p4052_p1 = pneg %p4453_p10 }
  0x81   : > { %s4055_s15 = scalar_lea.hbm %s4983_s0, 256  ;;  %p4056_p11 = scmp.lt.u32.totalorder %s4449_s8, %s4983_s0 }
  0x82   : > { %p4053_p3 = pnand %p4052_p1, %p4051_p8  ;;  %p4057_p6 = scmp.lt.u32.totalorder %s4055_s15, %s4050_s1 }
  0x83   : > { %p4059_p0 = scmp.lt.u32.totalorder %s4050_s1, %s4449_s8 }
  0x84   : > { %p4054_p12 = pneg %p4053_p3  ;;  %p4058_p13 = por %p4057_p6, %p4056_p11 }
  0x86   : > { %p4060_p7 = por %p4059_p0, %p4058_p13 }
  0x88   : > { %p4061_p5 = pnand %p4060_p7, %p4054_p12 }
  0x8a   : > { %4064 = shalt.err (!%p4061_p5)
}
  0x8b   : > { %s4065_s23 = scalar_lea.vmem %s4457_s9, 128  ;;  %s4178_s20 = smov [#allocation4]  }
  0x8c   : > { %p4066_p8 = scmp.ne.s32.totalorder %s4457_s9, %s4065_s23  ;;  %s4070_s25 = sshll.u32 %s4178_s20, 4  ;;  %s4071_s25 = int_to_ptr.vmem [resolvable:$false] %s4070_s25 }
  0x8d   : > { %s4072_s19 = scalar_lea.vmem %s4071_s25, 256  ;;  %p4073_p4 = scmp.lt.s32.totalorder %s4457_s9, %s4071_s25 }
  0x8e   : > { %p4068_p3 = pnand %p4066_p8, %p4052_p1  ;;  %p4074_p11 = scmp.lt.s32.totalorder %s4072_s19, %s4065_s23 }
  0x90   : > { %p4069_p9 = pneg %p4068_p3  ;;  %p4075_p6 = por %p4074_p11, %p4073_p4 }
  0x92   : > { %p4076_p13 = pnand %p4075_p6, %p4069_p9 }
  0x94   : > { %4079 = shalt.err (!%p4076_p13)
}
  0x95   : > { %3802 = dma.hbm_to_vmem [thread:$0]  (!%p4453_p10), %s4449_s8, 128, %s4457_s9, %s344_s27  }
  0x96   : > { %p5015_p12 = scmp.ne.s32.totalorder %s5004_s17, 0 }
  0x97   : > { %s4487_s1 = sand.u32 (!%p5015_p12), 1, %s4154_s10  }
  0x98   : > { %363 = sbr.rel (%p5015_p12) target bundleno = 1570 (0x622), region = 56  ;;  %s3492_s15 = sshll.u32 (!%p5015_p12), %s4487_s1, 3 }
  0x99   : > { %s366_s24 = scalar_lea.sflag (!%p5015_p12), [#allocation5], %s4487_s1  ;;  %s369_s22 = scalar_lea.vmem (!%p5015_p12), [#allocation4], %s3492_s15 }
  0x9f   : > { %4133 = dma.done.wait (%p4428_p2), %s366_s24, 128  }
  0xa0   : > { %4135 = vsyncadd (%p4428_p2), %s366_s24, 4294967168  ;;  %p5016_p4 = scmp.ne.s32.totalorder %s5003_s16, 0 }
  0xa2   : > { %4137 = dma.done.wait (%p5016_p4), [#allocation8], 1024  }
  0xa3   : > { %4139 = vsyncadd (%p5016_p4), [#allocation8], 4294966272 }
  0xa4   : > { %4141 = dma.done.wait (%p5016_p4), [#allocation11], 1024  }
  0xa5   : > { %4143 = vsyncadd (%p5016_p4), [#allocation11], 4294966272  ;;  %v4179_v0 = vmov 0.0|0.0   ;;  %vm4180_vm0 = vmmov 0   ;;  %v4181_v1 = vmov 0.0   ;;  %v425_v2 = vld [vmem:[#allocation9] sm:$0xff]  ;;  %v618_v36 = vlaneseq }
  0xa6   : > { %3742 = vmatprep.subr.bf16.mxu0 %v4179_v0  ;;  %3626 = vmatprep.mubr.msk.f32.mxu0 %vm4180_vm0, %v4181_v1  ;;  %v426_v3 = vld [vmem:[#allocation9 + $0x8] sm:$0xff]  ;;  %v427_v4 = vld [vmem:[#allocation9 + $0x10] sm:$0xff]  ;;  %v428_v6 = vld [vmem:[#allocation9 + $0x18] sm:$0xff]  ;;  %vm436_vm1 = vcmask 261120   ;;  %s4182_s12 = smov 124   ;;  %s4183_s8 = smov 116  }
  0xa7   : > { %3748 = vmatprep.subr.bf16.mxu1 %v4179_v0  ;;  %3637 = vmatprep.mubr.msk.f32.mxu1 %vm4180_vm0, %v4181_v1  ;;  %v3743_v5 = vpack.c.bf16 %v426_v3, %v425_v2  ;;  %v3746_v7 = vpack.c.bf16 %v428_v6, %v427_v4  ;;  %v1199_v8 = vld [vmem:[#allocation7] sm:$0xff]  ;;  %v1200_v9 = vld [vmem:[#allocation7 + $0x8] sm:$0xff]  ;;  %v424_v10 = vld [vmem:[%s369_s22] sm:$0xff]  ;;  %s4184_s27 = smov 120   ;;  %s4185_s23 = smov 112   ;;  %v4558_v40 = vshrl.u32 %v618_v36, 7 }
  0xa8   : > { %v3755_v11 = vpack.c.bf16 %v1200_v9, %v1199_v8  ;;  %v1201_v12 = vld [vmem:[#allocation7 + $0x10] sm:$0xff]  ;;  %v1202_v13 = vld [vmem:[#allocation7 + $0x18] sm:$0xff]  ;;  %v510_v15 = vld [vmem:[#allocation10] sm:$0xff]  ;;  %s4186_s20 = smov 104   ;;  %s4187_s25 = smov 108   ;;  %vm885_vm2 = vcmask 31744  }
  0xa9   : > { %3744 = vmatpush3.bf16.msra.mxu0 %v3743_v5  ;;  %v3758_v14 = vpack.c.bf16 %v1202_v13, %v1201_v12  ;;  %v511_v16 = vld [vmem:[#allocation10 + $0x8] sm:$0xff]  ;;  %v512_v18 = vld [vmem:[#allocation10 + $0x10] sm:$0xff]  ;;  %v513_v19 = vld [vmem:[#allocation10 + $0x18] sm:$0xff]  ;;  %s4188_s19 = smov 100   ;;  %v4189_v34 = vmov 1983009808  }
  0xaa   : > { %3745 = vmatprep.subr.bf16.mxu0 %v4179_v0  ;;  %v3749_v17 = vpack.c.bf16 %v511_v16, %v510_v15  ;;  %v3752_v20 = vpack.c.bf16 %v513_v19, %v512_v18  ;;  %v3498_v21 = vld [vmem:[%s4988_s5] ss:$0 sm:$0xff]  ;;  %v616_v35 = vunpack.c.l.s4 %v4189_v34  ;;  %v4190_v37 = vmov 1934713408   ;;  %s4191_s16 = smov 8   ;;  %s4192_s17 = smov 4  }
  0xab   : > { %v3518_v25 = vld [vmem:[%s4987_s4] ss:$0 sm:$0xff]  ;;  %v680_v38 = vunpack.c.l.s4 %v4190_v37  ;;  %vm2221_vm4 = vcmask 64512   ;;  %s4195_s9 = smov 16   ;;  %s4196_s26 = smov 28   ;;  %vm3252_vm5 = vcmask 97280  }
  0xac   : > { %3750 = vmatpush3.bf16.msra.mxu1 %v3749_v17  ;;  %v3500_v30 = vld [vmem:[%s4989_s6] ss:$0 sm:$0xff]  ;;  %v617_v39 = vunpack.c.0.s8 %v616_v35  ;;  %vm3254_vm6 = vcmask 130048   ;;  %vm3256_vm7 = vcmask 162816   ;;  %vm3258_vm8 = vcmask 195584   ;;  %s419_s22 = scalar_lea.vmem [#allocation13], %s3492_s15 }
  0xad   : > { %3747 = vmatpush3.bf16.msra.mxu0 %v3746_v7  ;;  %3751 = vmatprep.subr.bf16.mxu1 %v4179_v0  ;;  %v681_v43 = vunpack.c.0.s8 %v680_v38  ;;  %vm3260_vm9 = vcmask 228352   ;;  %p5022_p9 = scmp.ne.s32.totalorder %s5012_s28, 0  ;;  %s4198_s15 = smov [#allocation13]  }
  0xae   : > { %3754 = vmatprep.subr.bf16.mxu0 %v4179_v0  ;;  %v4561_v44 = vsub.s32 %v617_v39, %v4558_v40 }
  0xaf   : > { %v4564_v50 = vsub.s32 %v681_v43, %v4558_v40 }
  0xb0   : > { %3627 = vmatmul.mubr.msk.f32.vlgmr.msra.gmra.mrb[0].mxu0 %vm436_vm1, %v424_v10  ;;  %3753 = vmatpush3.bf16.msra.mxu1 %v3752_v20 }
  0xb1   : > { %3756 = vmatpush3.bf16.msra.mxu0 %v3755_v11  ;;  %3648 = vmatprep.mubr.msk.f32.mxu0 %vm4180_vm0, %v4181_v1 }
  0xb2   : > { %3757 = vmatprep.subr.bf16.mxu0 %v4179_v0  ;;  %3651 = vmatprep.subr.mxu1 %v4181_v1 }
  0xb3   : > { %3638 = vmatmul.mubr.msk.f32.vlgmr.msra.gmra.mrb[0].mxu1 %vm436_vm1, %v424_v10 }
  0xb4   : > { %3653 = vmatprep.mubr.msk.f32.mxu1 %vm4180_vm0, %v4181_v1 }
  0xb5   : > { %3759 = vmatpush3.bf16.msra.mxu0 %v3758_v14 }
  0xb6   : > { %3671 = vmatprep.subr.mxu0 %v4181_v1 }
  0xb8   : > { %3649 = vmatmul.mubr.msk.f32.vlgmr.msra.gmra.mrb[2].mxu0 %vm436_vm1, %v424_v10 }
  0xb9   : > { %3673 = vmatprep.mubr.msk.f32.mxu0 %vm4180_vm0, %v4181_v1 }
 0x183   : > { %v506_v22 = vpop.f32.mrb[0].mxu0 }
 0x184   : > { %v507_v23 = vadd.f32 %v3498_v21, %v506_v22  ;;  %v3628_v24 = vpop.f32.mrb[1].mxu0 }
 0x186   : > { %592 = vrot.lane.b32.xlu0 %v507_v23, %s4182_s12  ;;  %598 = vrot.lane.b32.xlu1 %v507_v23, %s4183_s8  ;;  %v587_v31 = vpop.f32.mrb[0].mxu1 }
 0x187   : > { %v4548_v32 = vadd.f32 %v3500_v30, %v587_v31  ;;  %v3639_v33 = vpop.f32.mrb[1].mxu1 }
 0x18a   : > { %595 = vrot.lane.b32.xlu0 %v507_v23, %s4184_s27 }
 0x18b   : > { %v1280_v26 = vpop.f32.mrb[2].mxu0 }
 0x18c   : > { %v1281_v27 = vadd.f32 %v3518_v25, %v1280_v26  ;;  %v3650_v28 = vpop.f32.mrb[3].mxu0 }
 0x18e   : > { %v4533_v29 = vmul.f32 0.5, %v1281_v27 }
 0x190   : > { %1289 = vrot.lane.b32.xlu0 %v4533_v29, %s4184_s27  ;;  %1286 = vrot.lane.b32.xlu1 %v4533_v29, %s4182_s12 }
 0x194   : > { %601 = vrot.lane.b32.xlu0 %v507_v23, %s4185_s23  ;;  %1292 = vrot.lane.b32.xlu1 %v4533_v29, %s4183_s8 }
 0x198   : > { %607 = vrot.lane.b32.xlu0 %v507_v23, %s4186_s20  ;;  %604 = vrot.lane.b32.xlu1 %v507_v23, %s4187_s25 }
 0x19c   : > { %1295 = vrot.lane.b32.xlu0 %v4533_v29, %s4185_s23  ;;  %610 = vrot.lane.b32.xlu1 %v507_v23, %s4188_s19 }
 0x1a0   : > { %1301 = vrot.lane.b32.xlu0 %v4533_v29, %s4186_s20  ;;  %1298 = vrot.lane.b32.xlu1 %v4533_v29, %s4187_s25 }
 0x1a4   : > { %1304 = vrot.lane.b32.xlu1 %v4533_v29, %s4188_s19  ;;  %895 = vrot.lane.b32.xlu0 %v4548_v32, %s4182_s12  ;;  %s4193_s12 = smov 12  }
 0x1a8   : > { %898 = vrot.lane.b32.xlu1 %v4548_v32, %s4184_s27  ;;  %901 = vrot.lane.b32.xlu0 %v4548_v32, %s4183_s8  ;;  %s4194_s8 = smov 20   ;;  %s4197_s27 = smov 24  }
 0x1ac   : > { %907 = vrot.lane.b32.xlu1 %v4548_v32, %s4187_s25  ;;  %904 = vrot.lane.b32.xlu0 %v4548_v32, %s4185_s23  ;;  %s5019_s23 = sld [smem:[#allocation18_spill]] }
 0x1b0   : > { %910 = vrot.lane.b32.xlu1 %v4548_v32, %s4186_s20 }
 0x1b2   : > { %s3563_s24 = sshll.u32 %s5019_s23, 7  ;;  %s4084_s23 = sshll.u32 %s4198_s15, 4  ;;  %s4085_s23 = int_to_ptr.vmem [resolvable:$false] %s4084_s23 }
 0x1b3   : > { %s4086_s20 = scalar_lea.vmem %s4085_s23, 256 }
 0x1f8   : > { %v593_v41 = vpop.permute.xlu0 %592  ;;  %v599_v42 = vpop.permute.xlu1 %598 }
 0x1f9   : > { %v629_v45 = vcombine.low %v593_v41, %v599_v42  ;;  %v630_v46 = vcombine.high %v593_v41, %v599_v42 }
 0x1fb   : > { %v637_v51 = vrot.slane %v629_v45, %v4561_v44  ;;  %v644_v52 = vrot.slane %v630_v46, %v4561_v44 }
 0x1fc   : > { %v596_v47 = vpop.permute.xlu0 %595 }
 0x1fd   : > { %v613_v48 = vcombine.low %v507_v23, %v596_v47  ;;  %v614_v49 = vcombine.high %v507_v23, %v596_v47 }
 0x1ff   : > { %v621_v53 = vrot.slane %v613_v48, %v4561_v44  ;;  %v628_v54 = vrot.slane %v614_v49, %v4561_v44 }
 0x201   : > { %v677_v55 = vcombine.low %v621_v53, %v637_v51  ;;  %v678_v56 = vcombine.high %v621_v53, %v637_v51  ;;  %v693_v57 = vcombine.low %v628_v54, %v644_v52  ;;  %v694_v58 = vcombine.high %v628_v54, %v644_v52 }
 0x202   : > { %v1290_v59 = vpop.permute.xlu0 %1289  ;;  %v1287_v60 = vpop.permute.xlu1 %1286 }
 0x203   : > { %v685_v61 = vrot.slane %v677_v55, %v4564_v50  ;;  %v692_v62 = vrot.slane %v678_v56, %v4564_v50  ;;  %v701_v63 = vrot.slane %v693_v57, %v4564_v50  ;;  %v708_v2 = vrot.slane %v694_v58, %v4564_v50 }
 0x204   : > { %v1307_v7 = vcombine.low %v4533_v29, %v1290_v59  ;;  %v1308_v8 = vcombine.high %v4533_v29, %v1290_v59 }
 0x205   : > { %v3502_v3 = vcombine.low %v685_v61, %v692_v62  ;;  %v3504_v4 = vcombine.high %v685_v61, %v692_v62  ;;  %v3506_v5 = vcombine.low %v701_v63, %v708_v2  ;;  %v3508_v6 = vcombine.high %v701_v63, %v708_v2 }
 0x206   : > { %v602_v9 = vpop.permute.xlu0 %601  ;;  %v1293_v10 = vpop.permute.xlu1 %1292  ;;  %v1315_v21 = vrot.slane %v1307_v7, %v4561_v44  ;;  %v1322_v22 = vrot.slane %v1308_v8, %v4561_v44 }
 0x207   : > { %v757_v11 = vrot.slane %v3502_v3, %v4561_v44  ;;  %v773_v12 = vrot.slane %v3504_v4, %v4561_v44  ;;  %v789_v13 = vrot.slane %v3506_v5, %v4561_v44  ;;  %v805_v14 = vrot.slane %v3508_v6, %v4561_v44 }
 0x208   : > { %v1323_v15 = vcombine.low %v1287_v60, %v1293_v10  ;;  %v1324_v16 = vcombine.high %v1287_v60, %v1293_v10 }
 0x209   : > { %v813_v17 = vcombine.low %v757_v11, %v773_v12  ;;  %v814_v18 = vcombine.high %v757_v11, %v773_v12  ;;  %v845_v19 = vcombine.low %v789_v13, %v805_v14  ;;  %v846_v20 = vcombine.high %v789_v13, %v805_v14 }
 0x20a   : > { %v1331_v23 = vrot.slane %v1323_v15, %v4561_v44  ;;  %v1338_v24 = vrot.slane %v1324_v16, %v4561_v44  ;;  %v608_v25 = vpop.permute.xlu0 %607  ;;  %v605_v26 = vpop.permute.xlu1 %604 }
 0x20b   : > { %v821_v27 = vrot.slane %v813_v17, %v4564_v50  ;;  %v828_v28 = vrot.slane %v814_v18, %v4564_v50  ;;  %v853_v29 = vrot.slane %v845_v19, %v4564_v50  ;;  %v860_v30 = vrot.slane %v846_v20, %v4564_v50 }
 0x20c   : > { %v1371_v31 = vcombine.low %v1315_v21, %v1331_v23  ;;  %v1372_v33 = vcombine.high %v1315_v21, %v1331_v23  ;;  %v1387_v34 = vcombine.low %v1322_v22, %v1338_v24  ;;  %v1388_v35 = vcombine.high %v1322_v22, %v1338_v24 }
 0x20d   : > { %v877_v37 = vcombine.low %v821_v27, %v853_v29  ;;  %v878_v38 = vcombine.high %v821_v27, %v853_v29  ;;  %v879_v39 = vcombine.low %v828_v28, %v860_v30  ;;  %v880_v41 = vcombine.high %v828_v28, %v860_v30 }
 0x20e   : > { %v1379_v42 = vrot.slane %v1371_v31, %v4564_v50  ;;  %v1386_v43 = vrot.slane %v1372_v33, %v4564_v50  ;;  %v1395_v45 = vrot.slane %v1387_v34, %v4564_v50  ;;  %v1402_v46 = vrot.slane %v1388_v35, %v4564_v50  ;;  %v1296_v47 = vpop.permute.xlu0 %1295  ;;  %v611_v48 = vpop.permute.xlu1 %610 }
 0x20f   : > { %886 = vst.msk [vmem:[#allocation2] sm:$0xff] %vm885_vm2, %v877_v37  ;;  %887 = vst.msk [vmem:[#allocation2 + $0x8] sm:$0xff] %vm885_vm2, %v878_v38  ;;  %v645_v49 = vcombine.low %v602_v9, %v608_v25  ;;  %v646_v51 = vcombine.high %v602_v9, %v608_v25  ;;  %v661_v52 = vcombine.low %v605_v26, %v611_v48 }
 0x210   : > { %888 = vst.msk [vmem:[#allocation2 + $0x10] sm:$0xff] %vm885_vm2, %v879_v39  ;;  %889 = vst.msk [vmem:[#allocation2 + $0x18] sm:$0xff] %vm885_vm2, %v880_v41  ;;  %v662_v53 = vcombine.high %v605_v26, %v611_v48  ;;  %v3520_v54 = vcombine.low %v1379_v42, %v1386_v43  ;;  %v3522_v55 = vcombine.high %v1379_v42, %v1386_v43 }
 0x211   : > { %v3524_v56 = vcombine.low %v1395_v45, %v1402_v46  ;;  %v3526_v57 = vcombine.high %v1395_v45, %v1402_v46  ;;  %v653_v58 = vrot.slane %v645_v49, %v4561_v44  ;;  %v660_v59 = vrot.slane %v646_v51, %v4561_v44 }
 0x212   : > { %v669_v60 = vrot.slane %v661_v52, %v4561_v44  ;;  %v676_v61 = vrot.slane %v662_v53, %v4561_v44  ;;  %v4601_v62 = vrot.slane %v3520_v54, %v4561_v44  ;;  %v4604_v63 = vrot.slane %v3522_v55, %v4561_v44  ;;  %v1299_v4 = vpop.permute.xlu1 %1298  ;;  %v1302_v9 = vpop.permute.xlu0 %1301 }
 0x213   : > { %v4607_v2 = vrot.slane %v3524_v56, %v4561_v44  ;;  %v4610_v3 = vrot.slane %v3526_v57, %v4561_v44  ;;  %v1339_v18 = vcombine.low %v1296_v47, %v1302_v9  ;;  %v1340_v19 = vcombine.high %v1296_v47, %v1302_v9 }
 0x214   : > { %v709_v5 = vcombine.low %v653_v58, %v669_v60  ;;  %v710_v6 = vcombine.high %v653_v58, %v669_v60  ;;  %v725_v7 = vcombine.low %v660_v59, %v676_v61  ;;  %v726_v8 = vcombine.high %v660_v59, %v676_v61 }
 0x215   : > { %v1507_v10 = vcombine.low %v4601_v62, %v4604_v63  ;;  %v1508_v11 = vcombine.high %v4601_v62, %v4604_v63  ;;  %v1539_v12 = vcombine.low %v4607_v2, %v4610_v3  ;;  %v1540_v13 = vcombine.high %v4607_v2, %v4610_v3 }
 0x216   : > { %v717_v14 = vrot.slane %v709_v5, %v4564_v50  ;;  %v724_v15 = vrot.slane %v710_v6, %v4564_v50  ;;  %v733_v16 = vrot.slane %v725_v7, %v4564_v50  ;;  %v740_v17 = vrot.slane %v726_v8, %v4564_v50  ;;  %v1305_v20 = vpop.permute.xlu1 %1304  ;;  %v1579_v21 = vld [vmem:[#allocation2] sm:$0xff]  ;;  %v1580_v53 = vld [vmem:[#allocation2 + $0x8] sm:$0xff] }
 0x217   : > { %v1515_v22 = vrot.slane %v1507_v10, %v4564_v50  ;;  %v1547_v23 = vrot.slane %v1539_v12, %v4564_v50  ;;  %3652 = vmatpush3.xpose.msk.msra.mxu1 %vm885_vm2, %v1579_v21  ;;  %v1347_v28 = vrot.slane %v1339_v18, %v4561_v44  ;;  %v1354_v29 = vrot.slane %v1340_v19, %v4561_v44  ;;  %v1582_v63 = vld [vmem:[#allocation2 + $0x18] sm:$0xff] }
 0x218   : > { %v3503_v24 = vcombine.low %v717_v14, %v724_v15  ;;  %v3505_v25 = vcombine.high %v717_v14, %v724_v15  ;;  %v3507_v26 = vcombine.low %v733_v16, %v740_v17  ;;  %v3509_v27 = vcombine.high %v733_v16, %v740_v17  ;;  %3656 = vmatprep.subr.mxu1 %v4181_v1  ;;  %v1581_v14 = vld [vmem:[#allocation2 + $0x10] sm:$0xff] }
 0x219   : > { %v1355_v30 = vcombine.low %v1299_v4, %v1305_v20  ;;  %v1356_v31 = vcombine.high %v1299_v4, %v1305_v20  ;;  %v1571_v41 = vcombine.low %v1515_v22, %v1547_v23  ;;  %v1572_v42 = vcombine.high %v1515_v22, %v1547_v23 }
 0x21a   : > { %v764_v33 = vrot.slane %v3503_v24, %v4561_v44  ;;  %v780_v34 = vrot.slane %v3505_v25, %v4561_v44  ;;  %v796_v35 = vrot.slane %v3507_v26, %v4561_v44  ;;  %v812_v37 = vrot.slane %v3509_v27, %v4561_v44 }
 0x21b   : > { %v1363_v38 = vrot.slane %v1355_v30, %v4561_v44  ;;  %v1370_v39 = vrot.slane %v1356_v31, %v4561_v44  ;;  %3654 = vmatmul.mubr.msk.f32.vlgmr.msra.gmra.mrb[2].mxu1 %vm885_vm2, %v1571_v41  ;;  %v1522_v15 = vrot.slane %v1508_v11, %v4564_v50  ;;  %v1554_v16 = vrot.slane %v1540_v13, %v4564_v50 }
 0x21c   : > { %v829_v43 = vcombine.low %v764_v33, %v780_v34  ;;  %v830_v45 = vcombine.high %v764_v33, %v780_v34  ;;  %v861_v46 = vcombine.low %v796_v35, %v812_v37  ;;  %v862_v47 = vcombine.high %v796_v35, %v812_v37  ;;  %3657 = vmatpush3.xpose.msk.msra.mxu1 %vm885_vm2, %v1580_v53  ;;  %v896_v35 = vpop.permute.xlu0 %895  ;;  %v899_v37 = vpop.permute.xlu1 %898 }
 0x21d   : > { %v1403_v48 = vcombine.low %v1347_v28, %v1363_v38  ;;  %v1404_v49 = vcombine.high %v1347_v28, %v1363_v38  ;;  %v1419_v51 = vcombine.low %v1354_v29, %v1370_v39  ;;  %v1420_v52 = vcombine.high %v1354_v29, %v1370_v39  ;;  %3658 = vmatprep.mubr.msk.f32.mxu1 %vm4180_vm0, %v4181_v1 }
 0x21e   : > { %v837_v54 = vrot.slane %v829_v43, %v4564_v50  ;;  %v844_v55 = vrot.slane %v830_v45, %v4564_v50  ;;  %v869_v56 = vrot.slane %v861_v46, %v4564_v50  ;;  %v876_v57 = vrot.slane %v862_v47, %v4564_v50  ;;  %3661 = vmatprep.subr.mxu1 %v4181_v1 }
 0x21f   : > { %v1411_v58 = vrot.slane %v1403_v48, %v4564_v50  ;;  %v1418_v59 = vrot.slane %v1404_v49, %v4564_v50  ;;  %v1427_v60 = vrot.slane %v1419_v51, %v4564_v50  ;;  %v1434_v61 = vrot.slane %v1420_v52, %v4564_v50  ;;  %3659 = vmatmul.mubr.msk.f32.vlgmr.msra.gmra.mrb[4].mxu1 %vm885_vm2, %v1572_v42 }
 0x220   : > { %v881_v4 = vcombine.low %v837_v54, %v869_v56  ;;  %v882_v5 = vcombine.high %v837_v54, %v869_v56  ;;  %v883_v6 = vcombine.low %v844_v55, %v876_v57  ;;  %v884_v7 = vcombine.high %v844_v55, %v876_v57  ;;  %3662 = vmatpush3.xpose.msk.msra.mxu1 %vm885_vm2, %v1581_v14  ;;  %v902_v41 = vpop.permute.xlu0 %901 }
 0x221   : > { %v3521_v8 = vcombine.low %v1411_v58, %v1418_v59  ;;  %v3523_v9 = vcombine.high %v1411_v58, %v1418_v59  ;;  %v3525_v10 = vcombine.low %v1427_v60, %v1434_v61  ;;  %v3527_v12 = vcombine.high %v1427_v60, %v1434_v61  ;;  %3663 = vmatprep.mubr.msk.f32.mxu1 %vm4180_vm0, %v4181_v1 }
 0x222   : > { %890 = vst.msk [vmem:[#allocation2 + $0x20] sm:$0xff] %vm885_vm2, %v881_v4  ;;  %891 = vst.msk [vmem:[#allocation2 + $0x28] sm:$0xff] %vm885_vm2, %v882_v5  ;;  %3666 = vmatprep.subr.mxu1 %v4181_v1  ;;  %v1573_v21 = vcombine.low %v1522_v15, %v1554_v16  ;;  %v1574_v13 = vcombine.high %v1522_v15, %v1554_v16  ;;  %v916_v38 = vcombine.low %v4548_v32, %v899_v37 }
 0x223   : > { %892 = vst.msk [vmem:[#allocation2 + $0x30] sm:$0xff] %vm885_vm2, %v883_v6  ;;  %893 = vst.msk [vmem:[#allocation2 + $0x38] sm:$0xff] %vm885_vm2, %v884_v7  ;;  %v1458_v17 = vrot.slane %v3521_v8, %v4561_v44  ;;  %v1474_v18 = vrot.slane %v3523_v9, %v4561_v44  ;;  %v1490_v19 = vrot.slane %v3525_v10, %v4561_v44 }
 0x224   : > { %v1506_v20 = vrot.slane %v3527_v12, %v4561_v44  ;;  %3664 = vmatmul.mubr.msk.f32.vlgmr.msra.gmra.mrb[6].mxu1 %vm885_vm2, %v1573_v21  ;;  %v917_v39 = vcombine.high %v4548_v32, %v899_v37  ;;  %v932_v42 = vcombine.low %v896_v35, %v902_v41  ;;  %v933_v43 = vcombine.high %v896_v35, %v902_v41 }
 0x225   : > { %v1523_v22 = vcombine.low %v1458_v17, %v1474_v18  ;;  %v1524_v62 = vcombine.high %v1458_v17, %v1474_v18  ;;  %3667 = vmatpush3.xpose.msk.msra.mxu1 %vm885_vm2, %v1582_v63  ;;  %3668 = vmatprep.mubr.msk.f32.mxu1 %vm4180_vm0, %v4181_v1  ;;  %v924_v45 = vrot.slane %v916_v38, %v4561_v44 }
 0x226   : > { %v1555_v23 = vcombine.low %v1490_v19, %v1506_v20  ;;  %v1556_v11 = vcombine.high %v1490_v19, %v1506_v20  ;;  %3676 = vmatprep.subr.mxu1 %v4181_v1  ;;  %v931_v46 = vrot.slane %v917_v39, %v4561_v44  ;;  %v940_v47 = vrot.slane %v932_v42, %v4561_v44 }
 0x227   : > { %v1531_v2 = vrot.slane %v1523_v22, %v4564_v50  ;;  %v1538_v27 = vrot.slane %v1524_v62, %v4564_v50  ;;  %v947_v48 = vrot.slane %v933_v43, %v4561_v44  ;;  %v2209_v62 = vand.u32 127, %v618_v36 }
 0x228   : > { %v1563_v3 = vrot.slane %v1555_v23, %v4564_v50  ;;  %3669 = vmatmul.mubr.msk.f32.vlgmr.msra.gmra.mrb[8].mxu1 %vm885_vm2, %v1574_v13  ;;  %v1570_v28 = vrot.slane %v1556_v11, %v4564_v50  ;;  %v980_v49 = vcombine.low %v924_v45, %v940_v47  ;;  %v981_v51 = vcombine.high %v924_v45, %v940_v47 }
 0x229   : > { %v1583_v24 = vld [vmem:[#allocation2 + $0x20] sm:$0xff]  ;;  %v1584_v25 = vld [vmem:[#allocation2 + $0x28] sm:$0xff]  ;;  %3678 = vmatprep.mubr.msk.f32.mxu1 %vm4180_vm0, %v4181_v1  ;;  %v996_v52 = vcombine.low %v931_v46, %v947_v48  ;;  %v997_v53 = vcombine.high %v931_v46, %v947_v48  ;;  %vm4728_vm3 = vcmp.le.s32.totalorder %v2209_v62, %v4558_v40 }
 0x22a   : > { %3672 = vmatpush3.xpose.msk.msra.mxu0 %vm885_vm2, %v1583_v24  ;;  %3677 = vmatpush3.xpose.msk.msra.mxu1 %vm885_vm2, %v1584_v25  ;;  %v1575_v26 = vcombine.low %v1531_v2, %v1563_v3  ;;  %v1576_v29 = vcombine.high %v1531_v2, %v1563_v3  ;;  %v1585_v30 = vld [vmem:[#allocation2 + $0x30] sm:$0xff]  ;;  %v1586_v31 = vld [vmem:[#allocation2 + $0x38] sm:$0xff]  ;;  %v1577_v33 = vcombine.low %v1538_v27, %v1570_v28 }
 0x22b   : > { %3681 = vmatprep.subr.mxu0 %v4181_v1  ;;  %3686 = vmatprep.subr.mxu1 %v4181_v1  ;;  %v1578_v34 = vcombine.high %v1538_v27, %v1570_v28  ;;  %v988_v54 = vrot.slane %v980_v49, %v4564_v50  ;;  %v995_v55 = vrot.slane %v981_v51, %v4564_v50 }
 0x22c   : > { %v1004_v56 = vrot.slane %v996_v52, %v4564_v50  ;;  %v1011_v57 = vrot.slane %v997_v53, %v4564_v50 }
 0x22d   : > { %3674 = vmatmul.mubr.msk.f32.vlgmr.msra.gmra.mrb[4].mxu0 %vm885_vm2, %v1575_v26  ;;  %3679 = vmatmul.mubr.msk.f32.vlgmr.msra.gmra.mrb[10].mxu1 %vm885_vm2, %v1576_v29  ;;  %v3510_v58 = vcombine.low %v988_v54, %v995_v55  ;;  %v3512_v59 = vcombine.high %v988_v54, %v995_v55  ;;  %v4761_v55 = vpop.permute.xlu1 %907 }
 0x22e   : > { %3682 = vmatpush3.xpose.msk.msra.mxu0 %vm885_vm2, %v1585_v30  ;;  %3687 = vmatpush3.xpose.msk.msra.mxu1 %vm885_vm2, %v1586_v31  ;;  %v3514_v60 = vcombine.low %v1004_v56, %v1011_v57  ;;  %v3516_v61 = vcombine.high %v1004_v56, %v1011_v57  ;;  %v905_v56 = vpop.permute.xlu0 %904 }
 0x22f   : > { %3683 = vmatprep.mubr.msk.f32.mxu0 %vm4180_vm0, %v4181_v1  ;;  %3688 = vmatprep.mubr.msk.f32.mxu1 %vm4180_vm0, %v4181_v1  ;;  %v1060_v4 = vrot.slane %v3510_v58, %v4561_v44  ;;  %v1076_v5 = vrot.slane %v3512_v59, %v4561_v44 }
 0x230   : > { %3691 = vmatprep.subr.mxu0 %v4181_v1  ;;  %3696 = vmatprep.subr.mxu1 %v4181_v1  ;;  %v1092_v6 = vrot.slane %v3514_v60, %v4561_v44  ;;  %v1108_v7 = vrot.slane %v3516_v61, %v4561_v44 }
 0x231   : > { %3684 = vmatmul.mubr.msk.f32.vlgmr.msra.gmra.mrb[6].mxu0 %vm885_vm2, %v1577_v33  ;;  %3689 = vmatmul.mubr.msk.f32.vlgmr.msra.gmra.mrb[12].mxu1 %vm885_vm2, %v1578_v34  ;;  %v1116_v8 = vcombine.low %v1060_v4, %v1076_v5  ;;  %v1117_v9 = vcombine.high %v1060_v4, %v1076_v5  ;;  %v911_v57 = vpop.permute.xlu1 %910 }
 0x232   : > { %3693 = vmatprep.mubr.msk.f32.mxu0 %vm4180_vm0, %v4181_v1  ;;  %3698 = vmatprep.mubr.msk.f32.mxu1 %vm4180_vm0, %v4181_v1  ;;  %v1148_v10 = vcombine.low %v1092_v6, %v1108_v7  ;;  %v1149_v12 = vcombine.high %v1092_v6, %v1108_v7 }
 0x233   : > { %v1124_v14 = vrot.slane %v1116_v8, %v4564_v50  ;;  %v1131_v15 = vrot.slane %v1117_v9, %v4564_v50 }
 0x234   : > { %v1156_v16 = vrot.slane %v1148_v10, %v4564_v50  ;;  %v1163_v17 = vrot.slane %v1149_v12, %v4564_v50 }
 0x236   : > { %v1180_v18 = vcombine.low %v1124_v14, %v1156_v16  ;;  %v1181_v19 = vcombine.high %v1124_v14, %v1156_v16  ;;  %v1182_v20 = vcombine.low %v1131_v15, %v1163_v17  ;;  %v1183_v21 = vcombine.high %v1131_v15, %v1163_v17 }
 0x238   : > { %1188 = vst.msk [vmem:[#allocation3] sm:$0xff] %vm885_vm2, %v1180_v18  ;;  %1189 = vst.msk [vmem:[#allocation3 + $0x8] sm:$0xff] %vm885_vm2, %v1181_v19 }
 0x239   : > { %1190 = vst.msk [vmem:[#allocation3 + $0x10] sm:$0xff] %vm885_vm2, %v1182_v20  ;;  %1191 = vst.msk [vmem:[#allocation3 + $0x18] sm:$0xff] %vm885_vm2, %v1183_v21 }
 0x23f   : > { %v1587_v22 = vld [vmem:[#allocation3] sm:$0xff]  ;;  %v1588_v23 = vld [vmem:[#allocation3 + $0x8] sm:$0xff] }
 0x240   : > { %3692 = vmatpush3.msra.mxu0 %v1587_v22  ;;  %3697 = vmatpush3.msra.mxu1 %v1588_v23  ;;  %v1589_v18 = vld [vmem:[#allocation3 + $0x10] sm:$0xff] }
 0x241   : > { %3701 = vmatprep.subr.mxu0 %v4181_v1  ;;  %3706 = vmatprep.subr.mxu1 %v4181_v1 }
 0x2ee   : > { %v1668_v11 = vpop.f32.mrb[2].mxu1 }
 0x2ef   : > { %v2213_v2 = vsel %vm4728_vm3, %v1668_v11, -1e+30  ;;  %v3655_v3 = vpop.f32.mrb[3].mxu1 }
 0x2f0   : > { %v2222_v13 = vsel %vm2221_vm4, %v2213_v2, -inf  ;;  %v948_v3 = vcombine.low %v905_v56, %v911_v57 }
 0x2f1   : > { %2223 = vmax.xlane.f32.xlu0 %v2222_v13  ;;  %v1590_v13 = vld [vmem:[#allocation3 + $0x18] sm:$0xff] }
 0x2f2   : > { %v1744_v24 = vpop.f32.mrb[4].mxu1 }
 0x2f3   : > { %v2214_v25 = vsel %vm4728_vm3, %v1744_v24, -1e+30  ;;  %v3660_v26 = vpop.f32.mrb[5].mxu1 }
 0x2f4   : > { %v2225_v36 = vsel %vm2221_vm4, %v2214_v25, -inf  ;;  %v949_v26 = vcombine.high %v905_v56, %v911_v57 }
 0x2f5   : > { %2226 = vmax.xlane.f32.xlu1 %v2225_v36 }
 0x2f7   : > { %v1820_v40 = vpop.f32.mrb[6].mxu1 }
 0x2f8   : > { %v2215_v27 = vsel %vm4728_vm3, %v1820_v40, -1e+30  ;;  %v3665_v28 = vpop.f32.mrb[7].mxu1 }
 0x2f9   : > { %v2228_v29 = vsel %vm2221_vm4, %v2215_v27, -inf }
 0x2fa   : > { %2229 = vmax.xlane.f32.xlu1 %v2228_v29 }
 0x2fb   : > { %v1896_v30 = vpop.f32.mrb[8].mxu1 }
 0x2fc   : > { %v3670_v31 = vpop.f32.mrb[9].mxu1  ;;  %v2216_v42 = vsel %vm4728_vm3, %v1896_v30, -1e+30 }
 0x2fd   : > { %v2231_v52 = vsel %vm2221_vm4, %v2216_v42, -inf }
 0x300   : > { %v1972_v33 = vpop.f32.mrb[4].mxu0  ;;  %v2048_v35 = vpop.f32.mrb[10].mxu1 }
 0x301   : > { %v2217_v34 = vsel %vm4728_vm3, %v1972_v33, -1e+30  ;;  %v3675_v37 = vpop.f32.mrb[5].mxu0  ;;  %v2218_v38 = vsel %vm4728_vm3, %v2048_v35, -1e+30  ;;  %v3680_v39 = vpop.f32.mrb[11].mxu1  ;;  %v956_v33 = vrot.slane %v948_v3, %v4561_v44  ;;  %v963_v35 = vrot.slane %v949_v26, %v4561_v44 }
 0x302   : > { %v2234_v41 = vsel %vm2221_vm4, %v2217_v34, -inf  ;;  %v2237_v43 = vsel %vm2221_vm4, %v2218_v38, -inf }
 0x303   : > { %2235 = vmax.xlane.f32.xlu0 %v2234_v41  ;;  %2238 = vmax.xlane.f32.xlu1 %v2237_v43 }
 0x304   : > { %v2124_v45 = vpop.f32.mrb[6].mxu0  ;;  %v2200_v47 = vpop.f32.mrb[12].mxu1 }
 0x305   : > { %v2219_v46 = vsel %vm4728_vm3, %v2124_v45, -1e+30  ;;  %v3685_v48 = vpop.f32.mrb[7].mxu0  ;;  %v4753_v49 = vsel %vm4728_vm3, %v2200_v47, -1e+30  ;;  %v3690_v51 = vpop.f32.mrb[13].mxu1 }
 0x306   : > { %v2240_v53 = vsel %vm2221_vm4, %v2219_v46, -inf  ;;  %v2243_v54 = vsel %vm2221_vm4, %v4753_v49, -inf }
 0x307   : > { %2232 = vmax.xlane.f32.xlu0 %v2231_v52  ;;  %2241 = vmax.xlane.f32.xlu1 %v2240_v53 }
 0x31d   : > { %913 = vrot.lane.b32.xlu0 %v4548_v32, %s4188_s19  ;;  %s5020_s19 = sld [smem:[#allocation20_spill]] }
 0x33c   : > { %2244 = vmax.xlane.f32.xlu0 %v2243_v54 }
 0x37e   : > { %v4763_v58 = vpop.xlane.xlu0 %2223 }
 0x37f   : > { %v2246_v59 = vmax.f32 %v4763_v58, -1e+30 }
 0x381   : > { %v2278_v60 = vsub.f32 %v2213_v2, %v2246_v59 }
 0x382   : > { %v4768_v61 = vpop.xlane.xlu1 %2226 }
 0x383   : > { %v2286_v4 = vmul.f32 1.442695, %v2278_v60  ;;  %v2247_v32 = vmax.f32 %v4768_v61, -1e+30 }
 0x385   : > { %v2279_v5 = vsub.f32 %v2214_v25, %v2247_v32  ;;  %3890 = vpow2.f32 %v2286_v4 }
 0x387   : > { %v2288_v6 = vmul.f32 1.442695, %v2279_v5  ;;  %v4773_v7 = vpop.xlane.xlu1 %2229 }
 0x388   : > { %v2248_v8 = vmax.f32 %v4773_v7, -1e+30 }
 0x389   : > { %3892 = vpow2.f32 %v2288_v6 }
 0x38a   : > { %v2280_v9 = vsub.f32 %v2215_v27, %v2248_v8 }
 0x38c   : > { %v2290_v10 = vmul.f32 1.442695, %v2280_v9 }
 0x38e   : > { %3894 = vpow2.f32 %v2290_v10 }
 0x38f   : > { %v3891_v16 = vpop.eup %3890 }
 0x390   : > { %v4778_v12 = vpop.xlane.xlu0 %2235  ;;  %v4780_v14 = vpop.xlane.xlu1 %2238  ;;  %3694 = vmatmul.mubr.msk.f32.vlgmr.msra.gmra.mrb[8].mxu0 %vm2221_vm4, %v3891_v16  ;;  %v2310_v20 = vsel %vm2221_vm4, %v3891_v16, 0.0 }
 0x391   : > { %v2250_v15 = vmax.f32 %v4778_v12, -1e+30  ;;  %v2251_v17 = vmax.f32 %v4780_v14, -1e+30  ;;  %3702 = vmatpush3.msra.mxu0 %v1589_v18  ;;  %2311 = vadd.xlane.f32.xlu0 %v2310_v20 }
 0x392   : > { %3703 = vmatprep.mubr.msk.f32.mxu0 %vm4180_vm0, %v4181_v1  ;;  %3711 = vmatprep.subr.mxu0 %v4181_v1 }
 0x393   : > { %v2282_v19 = vsub.f32 %v2217_v34, %v2250_v15  ;;  %v3893_v62 = vpop.eup %3892  ;;  %v2283_v63 = vsub.f32 %v2218_v38, %v2251_v17 }
 0x394   : > { %v4788_v21 = vpop.xlane.xlu0 %2232  ;;  %v4791_v23 = vpop.xlane.xlu1 %2241  ;;  %3699 = vmatmul.mubr.msk.f32.vlgmr.msra.gmra.mrb[14].mxu1 %vm2221_vm4, %v3893_v62  ;;  %v2313_v25 = vsel %vm2221_vm4, %v3893_v62, 0.0 }
 0x395   : > { %v2249_v22 = vmax.f32 %v4788_v21, -1e+30  ;;  %v2294_v11 = vmul.f32 1.442695, %v2282_v19  ;;  %v2252_v2 = vmax.f32 %v4791_v23, -1e+30  ;;  %3707 = vmatpush3.msra.mxu1 %v1590_v13  ;;  %2314 = vadd.xlane.f32.xlu1 %v2313_v25 }
 0x396   : > { %3708 = vmatprep.mubr.msk.f32.mxu1 %vm4180_vm0, %v4181_v1  ;;  %3716 = vmatprep.subr.mxu1 %v4181_v1  ;;  %v2296_v29 = vmul.f32 1.442695, %v2283_v63  ;;  %v2259_v21 = vsub.f32 -1e+30, %v2251_v17 }
 0x397   : > { %v2281_v24 = vsub.f32 %v2216_v42, %v2249_v22  ;;  %v2284_v36 = vsub.f32 %v2219_v46, %v2252_v2  ;;  %3896 = vpow2.f32 %v2294_v11 }
 0x398   : > { %v914_v40 = vpop.permute.xlu0 %913  ;;  %v3895_v31 = vpop.eup %3894 }
 0x399   : > { %v2292_v27 = vmul.f32 1.442695, %v2281_v24  ;;  %v964_v28 = vcombine.low %v4761_v55, %v914_v40  ;;  %v965_v30 = vcombine.high %v4761_v55, %v914_v40  ;;  %v2298_v37 = vmul.f32 1.442695, %v2284_v36  ;;  %3704 = vmatmul.mubr.msk.f32.vlgmr.msra.gmra.mrb[10].mxu0 %vm2221_vm4, %v3895_v31 }
 0x39a   : > { %3713 = vmatprep.mubr.msk.f32.mxu0 %vm4180_vm0, %v4181_v1  ;;  %v2316_v13 = vsel %vm2221_vm4, %v3895_v31, 0.0 }
 0x39b   : > { %v972_v34 = vrot.slane %v964_v28, %v4561_v44  ;;  %3898 = vpow2.f32 %v2292_v27  ;;  %v979_v38 = vrot.slane %v965_v30, %v4561_v44 }
 0x39c   : > { %3900 = vpow2.f32 %v2296_v29 }
 0x39d   : > { %v1012_v39 = vcombine.low %v956_v33, %v972_v34  ;;  %v1013_v41 = vcombine.high %v956_v33, %v972_v34  ;;  %v1028_v42 = vcombine.low %v963_v35, %v979_v38  ;;  %v1029_v43 = vcombine.high %v963_v35, %v979_v38 }
 0x39e   : > { %3902 = vpow2.f32 %v2298_v37 }
 0x39f   : > { %v1020_v45 = vrot.slane %v1012_v39, %v4564_v50  ;;  %v1027_v46 = vrot.slane %v1013_v41, %v4564_v50  ;;  %v1036_v47 = vrot.slane %v1028_v42, %v4564_v50  ;;  %v1043_v48 = vrot.slane %v1029_v43, %v4564_v50 }
 0x3a0   : > { %v2254_v42 = vsub.f32 -1e+30, %v2246_v59  ;;  %v2255_v43 = vsub.f32 -1e+30, %v2247_v32 }
 0x3a1   : > { %v3511_v51 = vcombine.low %v1020_v45, %v1027_v46  ;;  %v3513_v52 = vcombine.high %v1020_v45, %v1027_v46  ;;  %v3515_v53 = vcombine.low %v1036_v47, %v1043_v48  ;;  %v3517_v54 = vcombine.high %v1036_v47, %v1043_v48  ;;  %v3897_v57 = vpop.eup %3896 }
 0x3a2   : > { %v2322_v9 = vsel %vm2221_vm4, %v3897_v57, 0.0  ;;  %v2264_v45 = vmul.f32 1.442695, %v2255_v43 }
 0x3a3   : > { %v1067_v55 = vrot.slane %v3511_v51, %v4561_v44  ;;  %v1083_v56 = vrot.slane %v3513_v52, %v4561_v44  ;;  %v1099_v60 = vrot.slane %v3515_v53, %v4561_v44  ;;  %v1115_v4 = vrot.slane %v3517_v54, %v4561_v44  ;;  %2323 = vadd.xlane.f32.xlu0 %v2322_v9 }
 0x3a4   : > { %v2257_v51 = vsub.f32 -1e+30, %v2249_v22 }
 0x3a5   : > { %v1132_v5 = vcombine.low %v1067_v55, %v1083_v56  ;;  %v1133_v6 = vcombine.high %v1067_v55, %v1083_v56  ;;  %v3899_v10 = vpop.eup %3898  ;;  %v1164_v16 = vcombine.low %v1099_v60, %v1115_v4  ;;  %v1165_v18 = vcombine.high %v1099_v60, %v1115_v4 }
 0x3a6   : > { %3709 = vmatmul.mubr.msk.f32.vlgmr.msra.gmra.mrb[16].mxu1 %vm2221_vm4, %v3899_v10  ;;  %v2319_v62 = vsel %vm2221_vm4, %v3899_v10, 0.0  ;;  %v3901_v63 = vpop.eup %3900  ;;  %v2268_v54 = vmul.f32 1.442695, %v2257_v51  ;;  %v2258_v60 = vsub.f32 -1e+30, %v2250_v15 }
 0x3a7   : > { %v1140_v19 = vrot.slane %v1132_v5, %v4564_v50  ;;  %v1147_v20 = vrot.slane %v1133_v6, %v4564_v50  ;;  %v1172_v11 = vrot.slane %v1164_v16, %v4564_v50  ;;  %v1179_v3 = vrot.slane %v1165_v18, %v4564_v50  ;;  %2320 = vadd.xlane.f32.xlu1 %v2319_v62 }
 0x3a8   : > { %3718 = vmatprep.mubr.msk.f32.mxu1 %vm4180_vm0, %v4181_v1  ;;  %v3903_v24 = vpop.eup %3902  ;;  %2317 = vadd.xlane.f32.xlu0 %v2316_v13  ;;  %v2325_v27 = vsel %vm2221_vm4, %v3901_v63, 0.0  ;;  %v2270_v9 = vmul.f32 1.442695, %v2258_v60  ;;  %v2272_v16 = vmul.f32 1.442695, %v2259_v21 }
 0x3a9   : > { %v1184_v25 = vcombine.low %v1140_v19, %v1172_v11  ;;  %v1185_v26 = vcombine.high %v1140_v19, %v1172_v11  ;;  %v1186_v36 = vcombine.low %v1147_v20, %v1179_v3  ;;  %v1187_v40 = vcombine.high %v1147_v20, %v1179_v3 }
 0x3aa   : > { %v2328_v28 = vsel %vm2221_vm4, %v3903_v24, 0.0  ;;  %v2260_v18 = vsub.f32 -1e+30, %v2252_v2 }
 0x3ab   : > { %1192 = vst.msk [vmem:[#allocation3 + $0x20] sm:$0xff] %vm885_vm2, %v1184_v25  ;;  %1193 = vst.msk [vmem:[#allocation3 + $0x28] sm:$0xff] %vm885_vm2, %v1185_v26  ;;  %2326 = vadd.xlane.f32.xlu1 %v2325_v27 }
 0x3ac   : > { %1194 = vst.msk [vmem:[#allocation3 + $0x30] sm:$0xff] %vm885_vm2, %v1186_v36  ;;  %1195 = vst.msk [vmem:[#allocation3 + $0x38] sm:$0xff] %vm885_vm2, %v1187_v40  ;;  %2329 = vadd.xlane.f32.xlu0 %v2328_v28  ;;  %v2274_v17 = vmul.f32 1.442695, %v2260_v18 }
 0x3b2   : > { %v1591_v29 = vld [vmem:[#allocation3 + $0x20] sm:$0xff]  ;;  %v1592_v30 = vld [vmem:[#allocation3 + $0x28] sm:$0xff] }
 0x3b3   : > { %3712 = vmatpush3.msra.mxu0 %v1591_v29  ;;  %3717 = vmatpush3.msra.mxu1 %v1592_v30  ;;  %v1593_v31 = vld [vmem:[#allocation3 + $0x30] sm:$0xff]  ;;  %v1594_v33 = vld [vmem:[#allocation3 + $0x38] sm:$0xff] }
 0x3b4   : > { %3714 = vmatmul.mubr.msk.f32.vlgmr.msra.gmra.mrb[12].mxu0 %vm2221_vm4, %v3897_v57  ;;  %3719 = vmatmul.mubr.msk.f32.vlgmr.msra.gmra.mrb[18].mxu1 %vm2221_vm4, %v3901_v63 }
 0x3b5   : > { %3721 = vmatprep.subr.mxu0 %v4181_v1  ;;  %3726 = vmatprep.subr.mxu1 %v4181_v1 }
 0x3b6   : > { %3722 = vmatpush3.msra.mxu0 %v1593_v31  ;;  %3727 = vmatpush3.msra.mxu1 %v1594_v33 }
 0x3b7   : > { %3723 = vmatprep.mubr.msk.f32.mxu0 %vm4180_vm0, %v4181_v1  ;;  %3728 = vmatprep.mubr.msk.f32.mxu1 %vm4180_vm0, %v4181_v1 }
 0x3b8   : > { %3724 = vmatmul.mubr.msk.f32.vlgmr.msra.gmra.mrb[14].mxu0 %vm2221_vm4, %v3903_v24  ;;  %3760 = vmatprep.subr.bf16.mxu0 %v4179_v0 }
 0x3b9   : > { %3739 = vmatprep.mubr.msk.f32.mxu0 %vm4180_vm0, %v4181_v1  ;;  %v2262_v1 = vmul.f32 1.442695, %v2254_v42 }
 0x3c9   : > { %v4853_v34 = vpop.xlane.xlu0 %2244 }
 0x3ca   : > { %v2253_v35 = vmax.f32 %v4853_v34, -1e+30 }
 0x3cc   : > { %v2285_v37 = vsub.f32 %v4753_v49, %v2253_v35  ;;  %v2256_v49 = vsub.f32 -1e+30, %v2248_v8 }
 0x3ce   : > { %v2300_v38 = vmul.f32 1.442695, %v2285_v37  ;;  %v2266_v46 = vmul.f32 1.442695, %v2256_v49 }
 0x3d0   : > { %3904 = vpow2.f32 %v2300_v38 }
 0x3d1   : > { %3906 = vpow2.f32 %v2262_v1 }
 0x3d2   : > { %3908 = vpow2.f32 %v2264_v45 }
 0x3d3   : > { %3910 = vpow2.f32 %v2266_v46 }
 0x3da   : > { %v3905_v39 = vpop.eup %3904 }
 0x3db   : > { %3729 = vmatmul.mubr.msk.f32.vlgmr.msra.gmra.mrb[20].mxu1 %vm2221_vm4, %v3905_v39  ;;  %v2331_v41 = vsel %vm2221_vm4, %v3905_v39, 0.0  ;;  %v3907_v47 = vpop.eup %3906 }
 0x3dc   : > { %2332 = vadd.xlane.f32.xlu1 %v2331_v41  ;;  %v2302_v52 = vmul.f32 0.0, %v3907_v47  ;;  %v3909_v58 = vpop.eup %3908 }
 0x3dd   : > { %v2303_v32 = vmul.f32 0.0, %v3909_v58  ;;  %v3911_v55 = vpop.eup %3910 }
 0x3de   : > { %v2304_v8 = vmul.f32 0.0, %v3911_v55 }
 0x41e   : > { %v2312_v48 = vpop.xlane.xlu0 %2311 }
 0x41f   : > { %v2334_v59 = vadd.f32 %v2312_v48, %v2302_v52 }
 0x421   : > { %3912 = vrcp.f32 %v2334_v59 }
 0x422   : > { %v2315_v61 = vpop.xlane.xlu1 %2314  ;;  %3914 = vpow2.f32 %v2268_v54 }
 0x423   : > { %v2335_v56 = vadd.f32 %v2315_v61, %v2303_v32 }
 0x425   : > { %3916 = vrcp.f32 %v2335_v56 }
 0x42b   : > { %v3913_v6 = vpop.eup %3912 }
 0x42c   : > { %v3915_v10 = vpop.eup %3914 }
 0x42d   : > { %v2305_v14 = vmul.f32 0.0, %v3915_v10 }
 0x42f   : > { %v3917_v15 = vpop.eup %3916 }
 0x430   : > { %v2324_v53 = vpop.xlane.xlu0 %2323 }
 0x434   : > { %v2321_v62 = vpop.xlane.xlu1 %2320 }
 0x435   : > { %v2318_v7 = vpop.xlane.xlu0 %2317  ;;  %v2337_v3 = vadd.f32 %v2321_v62, %v2305_v14  ;;  %v3263_v62 = vld [vmem:[#allocation12 + $0x8] sm:$0xff] }
 0x436   : > { %v2336_v57 = vadd.f32 %v2318_v7, %v2304_v8 }
 0x438   : > { %3918 = vrcp.f32 %v2336_v57  ;;  %v2327_v29 = vpop.xlane.xlu1 %2326 }
 0x439   : > { %3920 = vpow2.f32 %v2270_v9  ;;  %v2330_v1 = vpop.xlane.xlu0 %2329 }
 0x43a   : > { %3922 = vpow2.f32 %v2272_v16 }
 0x43b   : > { %3924 = vpow2.f32 %v2274_v17 }
 0x43c   : > { %3926 = vrcp.f32 %v2337_v3 }
 0x442   : > { %v3919_v26 = vpop.eup %3918 }
 0x443   : > { %v3921_v40 = vpop.eup %3920 }
 0x444   : > { %v3923_v27 = vpop.eup %3922  ;;  %v2306_v28 = vmul.f32 0.0, %v3921_v40 }
 0x445   : > { %v2307_v30 = vmul.f32 0.0, %v3923_v27  ;;  %v3925_v33 = vpop.eup %3924 }
 0x446   : > { %v2338_v37 = vadd.f32 %v2324_v53, %v2306_v28  ;;  %v3927_v41 = vpop.eup %3926  ;;  %v2308_v45 = vmul.f32 0.0, %v3925_v33 }
 0x447   : > { %v2339_v42 = vadd.f32 %v2327_v29, %v2307_v30 }
 0x448   : > { %3928 = vrcp.f32 %v2338_v37  ;;  %v2340_v47 = vadd.f32 %v2330_v1, %v2308_v45 }
 0x449   : > { %3930 = vrcp.f32 %v2339_v42 }
 0x44a   : > { %3932 = vrcp.f32 %v2340_v47 }
 0x463   : > { %v2411_v22 = vpop.f32.mrb[8].mxu0 }
 0x464   : > { %v2926_v4 = vadd.f32 %v2411_v22, %v2302_v52  ;;  %v3695_v5 = vpop.f32.mrb[9].mxu0 }
 0x465   : > { %v3929_v5 = vpop.eup %3928 }
 0x466   : > { %v2942_v19 = vmul.f32 %v3913_v6, %v2926_v4 }
 0x467   : > { %v2484_v20 = vpop.f32.mrb[14].mxu1 }
 0x468   : > { %v2927_v63 = vadd.f32 %v2484_v20, %v2303_v32  ;;  %v3700_v12 = vpop.f32.mrb[15].mxu1  ;;  %v3262_v20 = vld [vmem:[#allocation12] sm:$0xff] }
 0x469   : > { %v2261_v12 = vsub.f32 -1e+30, %v2253_v35  ;;  %v3761_v17 = vpack.c.bf16 %v3263_v62, %v3262_v20  ;;  %v2333_v42 = vpop.xlane.xlu1 %2332 }
 0x46a   : > { %v2943_v11 = vmul.f32 %v3917_v15, %v2927_v63  ;;  %v3931_v63 = vpop.eup %3930 }
 0x46b   : > { %3762 = vmatpush3.bf16.msra.mxu0 %v3761_v17  ;;  %v3933_v35 = vpop.eup %3932  ;;  %v2276_v29 = vmul.f32 1.442695, %v2261_v12 }
 0x46c   : > { %v2557_v13 = vpop.f32.mrb[10].mxu0  ;;  %3763 = vmatprep.subr.bf16.mxu0 %v4179_v0 }
 0x46d   : > { %v2928_v24 = vadd.f32 %v2557_v13, %v2304_v8  ;;  %v3705_v25 = vpop.f32.mrb[11].mxu0  ;;  %3934 = vpow2.f32 %v2276_v29 }
 0x46f   : > { %v2944_v23 = vmul.f32 %v3919_v26, %v2928_v24 }
 0x471   : > { %v2950_v2 = vcombine.low %v2942_v19, %v2944_v23  ;;  %v2951_v36 = vcombine.high %v2942_v19, %v2944_v23 }
 0x473   : > { %v2958_v48 = vrot.slane %v2950_v2, %v4561_v44  ;;  %v2965_v51 = vrot.slane %v2951_v36, %v4561_v44 }
 0x477   : > { %v3935_v0 = vpop.eup %3934 }
 0x478   : > { %v2309_v1 = vmul.f32 0.0, %v3935_v0 }
 0x479   : > { %v2630_v31 = vpop.f32.mrb[16].mxu1 }
 0x47a   : > { %v2929_v38 = vadd.f32 %v2630_v31, %v2305_v14  ;;  %v3710_v39 = vpop.f32.mrb[17].mxu1 }
 0x47c   : > { %v2945_v43 = vmul.f32 %v3927_v41, %v2929_v38 }
 0x47e   : > { %v2966_v49 = vcombine.low %v2943_v11, %v2945_v43  ;;  %v2967_v46 = vcombine.high %v2943_v11, %v2945_v43  ;;  %v2341_v43 = vadd.f32 %v2333_v42, %v2309_v1 }
 0x480   : > { %v2974_v52 = vrot.slane %v2966_v49, %v4561_v44  ;;  %v2981_v58 = vrot.slane %v2967_v46, %v4561_v44  ;;  %3936 = vrcp.f32 %v2341_v43 }
 0x482   : > { %v3014_v59 = vcombine.low %v2958_v48, %v2974_v52  ;;  %v3015_v53 = vcombine.high %v2958_v48, %v2974_v52  ;;  %v3030_v54 = vcombine.low %v2965_v51, %v2981_v58  ;;  %v3031_v61 = vcombine.high %v2965_v51, %v2981_v58 }
 0x484   : > { %v3022_v32 = vrot.slane %v3014_v59, %v4564_v50  ;;  %v3029_v55 = vrot.slane %v3015_v53, %v4564_v50  ;;  %v3038_v56 = vrot.slane %v3030_v54, %v4564_v50  ;;  %v3045_v7 = vrot.slane %v3031_v61, %v4564_v50 }
 0x486   : > { %v3552_v8 = vcombine.low %v3022_v32, %v3029_v55  ;;  %v3554_v57 = vcombine.high %v3022_v32, %v3029_v55  ;;  %v3556_v60 = vcombine.low %v3038_v56, %v3045_v7  ;;  %v3558_v21 = vcombine.high %v3038_v56, %v3045_v7  ;;  %v3264_v7 = vld [vmem:[#allocation12 + $0x10] sm:$0xff] }
 0x487   : > { %v2703_v22 = vpop.f32.mrb[12].mxu0  ;;  %v2776_v4 = vpop.f32.mrb[18].mxu1 }
 0x488   : > { %v2930_v6 = vadd.f32 %v2703_v22, %v2306_v28  ;;  %v2931_v9 = vadd.f32 %v2776_v4, %v2307_v30  ;;  %v3715_v10 = vpop.f32.mrb[13].mxu0  ;;  %v3720_v16 = vpop.f32.mrb[19].mxu1  ;;  %v3094_v18 = vrot.slane %v3552_v8, %v4561_v44  ;;  %v3110_v19 = vrot.slane %v3554_v57, %v4561_v44  ;;  %v3265_v8 = vld [vmem:[#allocation12 + $0x18] sm:$0xff] }
 0x489   : > { %v3126_v15 = vrot.slane %v3556_v60, %v4561_v44  ;;  %v3142_v14 = vrot.slane %v3558_v21, %v4561_v44  ;;  %v3764_v4 = vpack.c.bf16 %v3265_v8, %v3264_v7 }
 0x48a   : > { %v2946_v11 = vmul.f32 %v3929_v5, %v2930_v6  ;;  %v2947_v3 = vmul.f32 %v3931_v63, %v2931_v9  ;;  %v3151_v13 = vcombine.high %v3094_v18, %v3110_v19  ;;  %v3150_v24 = vcombine.low %v3094_v18, %v3110_v19  ;;  %v3937_v47 = vpop.eup %3936 }
 0x48b   : > { %v2849_v25 = vpop.f32.mrb[14].mxu0  ;;  %v3183_v26 = vcombine.high %v3126_v15, %v3142_v14  ;;  %v3182_v23 = vcombine.low %v3126_v15, %v3142_v14  ;;  %3765 = vmatpush3.bf16.msra.mxu0 %v3764_v4 }
 0x48c   : > { %v2932_v2 = vadd.f32 %v2849_v25, %v2308_v45  ;;  %v3725_v36 = vpop.f32.mrb[15].mxu0  ;;  %v3165_v40 = vrot.slane %v3151_v13, %v4564_v50  ;;  %v4891_v34 = vrot.slane %v3150_v24, %v4564_v50 }
 0x48d   : > { %v3197_v27 = vrot.slane %v3183_v26, %v4564_v50  ;;  %v4896_v28 = vrot.slane %v3182_v23, %v4564_v50 }
 0x48e   : > { %v2948_v30 = vmul.f32 %v3933_v35, %v2932_v2 }
 0x48f   : > { %v3216_v31 = vcombine.low %v3165_v40, %v3197_v27  ;;  %v3215_v33 = vcombine.high %v4891_v34, %v4896_v28  ;;  %v3217_v37 = vcombine.high %v3165_v40, %v3197_v27  ;;  %v3214_v38 = vcombine.low %v4891_v34, %v4896_v28 }
 0x490   : > { %v2982_v39 = vcombine.low %v2946_v11, %v2948_v30  ;;  %v2983_v41 = vcombine.high %v2946_v11, %v2948_v30 }
 0x491   : > { %3227 = vrot.lane.b32.xlu1 %v3216_v31, %s4191_s16  ;;  %3223 = vrot.lane.b32.xlu0 %v3215_v33, %s4192_s17  ;;  %s3362_s16 = sshll.u32 %s419_s22, 4  ;;  %s4935_s16 = int_to_ptr.vmem [resolvable:$true] %s3362_s16 }
 0x492   : > { %v2990_v58 = vrot.slane %v2982_v39, %v4561_v44  ;;  %v2997_v59 = vrot.slane %v2983_v41, %v4561_v44  ;;  %p4087_p0 = scmp.lt.s32.totalorder %s4935_s16, %s4085_s23 }
 0x495   : > { %3231 = vrot.lane.b32.xlu1 %v3217_v37, %s4193_s12  ;;  %v3560_v37 = vld [vmem:[%s5020_s19] ss:$0 sm:$0xff] }
 0x4ae   : > { %v2922_v45 = vpop.f32.mrb[20].mxu1 }
 0x4af   : > { %v2933_v49 = vadd.f32 %v2922_v45, %v2309_v1  ;;  %v3730_v46 = vpop.f32.mrb[21].mxu1 }
 0x4b1   : > { %v2949_v48 = vmul.f32 %v3937_v47, %v2933_v49 }
 0x4b3   : > { %v2998_v51 = vcombine.low %v2947_v3, %v2949_v48  ;;  %v2999_v52 = vcombine.high %v2947_v3, %v2949_v48 }
 0x4b5   : > { %v3006_v53 = vrot.slane %v2998_v51, %v4561_v44  ;;  %v3013_v54 = vrot.slane %v2999_v52, %v4561_v44 }
 0x4b7   : > { %v3046_v61 = vcombine.low %v2990_v58, %v3006_v53  ;;  %v3047_v32 = vcombine.high %v2990_v58, %v3006_v53  ;;  %v3062_v55 = vcombine.low %v2997_v59, %v3013_v54  ;;  %v3063_v56 = vcombine.high %v2997_v59, %v3013_v54 }
 0x4b9   : > { %v3054_v57 = vrot.slane %v3046_v61, %v4564_v50  ;;  %v3061_v60 = vrot.slane %v3047_v32, %v4564_v50  ;;  %v3070_v21 = vrot.slane %v3062_v55, %v4564_v50  ;;  %v3077_v22 = vrot.slane %v3063_v56, %v4564_v50 }
 0x4bb   : > { %v3553_v5 = vcombine.low %v3054_v57, %v3061_v60  ;;  %v3555_v6 = vcombine.high %v3054_v57, %v3061_v60  ;;  %v3557_v9 = vcombine.low %v3070_v21, %v3077_v22  ;;  %v3559_v10 = vcombine.high %v3070_v21, %v3077_v22 }
 0x4bd   : > { %v3101_v16 = vrot.slane %v3553_v5, %v4561_v44  ;;  %v3117_v18 = vrot.slane %v3555_v6, %v4561_v44  ;;  %v3133_v19 = vrot.slane %v3557_v9, %v4561_v44  ;;  %v3149_v20 = vrot.slane %v3559_v10, %v4561_v44 }
 0x4bf   : > { %v3166_v62 = vcombine.low %v3101_v16, %v3117_v18  ;;  %v3198_v63 = vcombine.low %v3133_v19, %v3149_v20  ;;  %v3167_v12 = vcombine.high %v3101_v16, %v3117_v18  ;;  %v3199_v15 = vcombine.high %v3133_v19, %v3149_v20 }
 0x4c1   : > { %v3174_v14 = vrot.slane %v3166_v62, %v4564_v50  ;;  %v3206_v17 = vrot.slane %v3198_v63, %v4564_v50  ;;  %v3181_v11 = vrot.slane %v3167_v12, %v4564_v50  ;;  %v3213_v3 = vrot.slane %v3199_v15, %v4564_v50 }
 0x4c3   : > { %v3219_v13 = vcombine.high %v3174_v14, %v3206_v17  ;;  %v3218_v24 = vcombine.low %v3174_v14, %v3206_v17  ;;  %v3221_v25 = vcombine.high %v3181_v11, %v3213_v3  ;;  %v3220_v26 = vcombine.low %v3181_v11, %v3213_v3 }
 0x4c5   : > { %3239 = vrot.lane.b32.xlu1 %v3219_v13, %s4194_s8  ;;  %3235 = vrot.lane.b32.xlu0 %v3218_v24, %s4195_s9  ;;  %s5021_s8 = sld [smem:[#allocation21_spill]] }
 0x4c9   : > { %3247 = vrot.lane.b32.xlu1 %v3221_v25, %s4196_s26  ;;  %3243 = vrot.lane.b32.xlu0 %v3220_v26, %s4197_s27  ;;  %s3348_s26 = scalar_lea.sflag [#allocation6], %s4487_s1  ;;  %s4080_s27 = scalar_lea.vmem %s4935_s16, 128 }
 0x4ca   : > { %p4081_p2 = scmp.ne.s32.totalorder %s4935_s16, %s4080_s27  ;;  %p4088_p7 = scmp.lt.s32.totalorder %s4086_s20, %s4080_s27 }
 0x4cb   : > { %s4933_s9 = scalar_lea.hbm %s5021_s8, %s3563_s24 }
 0x4cc   : > { %p4082_p10 = pnand %p4081_p2, %p5022_p9  ;;  %p4089_p5 = por %p4088_p7, %p4087_p0 }
 0x4ce   : > { %p4083_p1 = pneg %p4082_p10 }
 0x4d0   : > { %p4090_p8 = pnand %p4089_p5, %p4083_p1 }
 0x503   : > { %v3228_v44 = vpop.permute.xlu1 %3227  ;;  %v3224_v23 = vpop.permute.xlu0 %3223 }
 0x504   : > { %v3250_v2 = vsel %vm885_vm2, %v3214_v38, %v3224_v23 }
 0x505   : > { %v3251_v36 = vsel %vm2221_vm4, %v3250_v2, %v3228_v44 }
 0x507   : > { %v3232_v50 = vpop.permute.xlu1 %3231 }
 0x508   : > { %v3253_v40 = vsel %vm3252_vm5, %v3251_v36, %v3232_v50 }
 0x537   : > { %v3240_v35 = vpop.permute.xlu1 %3239  ;;  %v3236_v27 = vpop.permute.xlu0 %3235 }
 0x538   : > { %v3255_v29 = vsel %vm3254_vm6, %v3253_v40, %v3236_v27 }
 0x539   : > { %v3257_v31 = vsel %vm3256_vm7, %v3255_v29, %v3240_v35 }
 0x53b   : > { %v3248_v30 = vpop.permute.xlu1 %3247  ;;  %v3244_v34 = vpop.permute.xlu0 %3243 }
 0x53c   : > { %v3259_v28 = vsel %vm3258_vm8, %v3257_v31, %v3244_v34 }
 0x53d   : > { %v3261_v33 = vsel %vm3260_vm9, %v3259_v28, %v3248_v30 }
 0x53e   : > { %3740 = vmatmul.mubr.msk.f32.vlgmr.msra.gmra.mrb[16].mxu0 %vm436_vm1, %v3261_v33 }
 0x611   : > { %v3342_v38 = vpop.f32.mrb[16].mxu0 }
 0x612   : > { %v3343_v39 = vadd.f32 %v3560_v37, %v3342_v38  ;;  %v3741_v41 = vpop.f32.mrb[17].mxu0 }
 0x614   : > { %3346 = vst.msk [vmem:[%s419_s22] sm:$0xff] %vm436_vm1, %v3343_v39 }
 0x615   : > { %4093 = shalt.err (!%p4090_p8)
}
 0x616   : > { %s4094_s1 = scalar_lea.hbm %s4933_s9, 128  ;;  %s4098_s24 = scalar_lea.hbm %s5021_s8, 256 }
 0x617   : > { %p4095_p3 = scmp.ne.s32.totalorder %s4933_s9, %s4094_s1  ;;  %p4099_p13 = scmp.lt.u32.totalorder %s4933_s9, %s5021_s8 }
 0x618   : > { %p4100_p12 = scmp.lt.u32.totalorder %s4098_s24, %s4094_s1  ;;  %p4102_p2 = scmp.lt.u32.totalorder %s4094_s1, %s4933_s9 }
 0x619   : > { %p4096_p11 = pnand %p4095_p3, %p5022_p9 }
 0x61a   : > { %p4101_p4 = por %p4100_p12, %p4099_p13 }
 0x61b   : > { %p4097_p6 = pneg %p4096_p11 }
 0x61c   : > { %p4103_p10 = por %p4102_p2, %p4101_p4 }
 0x61e   : > { %p4104_p1 = pnand %p4103_p10, %p4097_p6 }
 0x620   : > { %4107 = shalt.err (!%p4104_p1)
}
 0x621   : > { %3784 = dma.vmem_to_hbm [thread:$0]  (%p5022_p9), %s4935_s16, 128, %s4933_s9, %s3348_s26  }
 0x622 PF: > { %s3374_s12 = sand.u32 1, %s4150_s30   ;;  %p5023_p0 = scmp.ne.s32.totalorder %s5013_s21, 0 }
 0x623   : > { %p5024_p7 = scmp.ge.s32.totalorder %s4170_s14, 2  ;;  %s3375_s27 = scalar_lea.sflag [#allocation6], %s3374_s12 }
 0x625   : > { %p3804_p5 = pnand %p5024_p7, %p5023_p0 }
 0x627   : > { %4145 = dma.done.wait (!%p3804_p5), %s3375_s27, 128  }
 0x628   : > { %4147 = vsyncadd (!%p3804_p5), %s3375_s27, 4294967168  ;;  %s27_s14 = sadd.s32 1, %s4170_s14   ;;  %s5025_s30 = smov %s4154_s10 }
 0x629   : > { %p24_p8 = scmp.ge.s32.totalorder %s27_s14, 4   ;;  %s5026_s10 = smov %s4158_s11 }
 0x62a   : > { %s5027_s11 = smov %s4437_s29  ;;  %s5028_s12 = smov %s4166_s13 }
 0x62b   : > { %s5029_s13 = smov %s5031_s18  ;;  %26 = sbr.rel (!%p24_p8) target bundleno = 12 (0xc), region = 122 }
 0x632   :  { %3380 = vsyncpa [#allocation5], 1 }
 0x633   :  { %3382 = vsyncpa [#allocation5 + $0x1], 1 }
 0x634   :  { %3383 = vsyncpa [#allocation8], 1 }
 0x635   :  { %3384 = vsyncpa [#allocation11], 1 }
 0x636   :  { %3385 = vsyncpa [#allocation6], 1 }
 0x637   :  { %3387 = vsyncpa [#allocation6 + $0x1], 1 }

</bundles_post_ra>
